<compile_context>
chip_gen: v7x
topology: tpu7x:2x2x1
jax: 0.10.0
libtpu: 0.0.40
codegen_flags: <defaults>
</compile_context>

<pallas_src>
import functools

import jax
import jax.numpy as jnp
from jax.experimental import pallas as pl
from jax.experimental.pallas import tpu as pltpu


def eprsann_kernel(x_ref, w1_ref, b1_ref, w2_ref, b2_ref, w3_ref, b3_ref, o_ref):
    # x_ref : (TN, C*L) f32         w1_ref: (C*L, H1) bf16   b1_ref: (1, H1) f32
    # w2_ref: (H1, H2)  f32         b2_ref: (1, H2)  f32
    # w3_ref: (1, H2)   f32 (pre-transposed Linear(H2,1) weight)   b3_ref: (1,1)
    # o_ref : (1, TN)   f32
    # bf16 cast in-VMEM (VPU work, hidden under the x DMA); MXU accumulates f32.
    xb = x_ref[...].astype(jnp.bfloat16)                          # (TN, C*L)
    h1 = jnp.dot(xb, w1_ref[...], preferred_element_type=jnp.float32)
    h1 = jnp.maximum(h1 + b1_ref[...], 0.0)                       # (TN, H1)
    h2 = jnp.dot(h1, w2_ref[...], preferred_element_type=jnp.float32)
    h2 = jnp.maximum(h2 + b2_ref[...], 0.0)                       # (TN, H2)
    # Final (H2 -> 1) projection written as a lane-dense (1, TN) row so the
    # store is an unmasked full-lane write (no width-1 masked vst).
    out_row = jnp.dot(w3_ref[...], h2.T, preferred_element_type=jnp.float32)
    o_ref[...] = (out_row + b3_ref[...]).astype(o_ref.dtype)      # (1, TN)


def _vmem_budget_bytes(block_n, CL, H1, H2):
    """Rough scoped-VMEM budget for one grid step (with pipeline double buffers)."""
    x_stream = 2 * block_n * CL * 4                 # double-buffered f32 x tiles
    x_cast = block_n * CL * 2                       # in-kernel bf16 copy of x
    acts = block_n * (H1 + 2 * H2 + 2) * 4          # h1, h2, h2.T, out row (f32)
    weights = 2 * (CL * H1 * 2 + H1 * H2 * 4 + (H1 + 2 * H2 + 1) * 4)
    out_bufs = 2 * block_n * 4                      # double-buffered (1, TN) output
    margin = 8 << 20                                # compiler-internal scratch slack
    return x_stream + x_cast + acts + weights + out_bufs + margin


@functools.partial(jax.jit, static_argnames=("block_n",))
def eprsann_forward(x, conv_w, conv_b, w1, b1, w2, b2, w3, b3, *, block_n=8192):
    N, C, L = x.shape
    K = conv_w.shape[1]
    assert L == K, "valid depthwise conv must collapse the length dim to 1"
    CL = C * L
    H1 = w1.shape[1]
    H2 = w2.shape[1]

    # Fold the depthwise conv into the first Linear (done once, outside kernel).
    w1p = (conv_w[:, :, None] * w1[:, None, :]).reshape(CL, H1)   # (C*L, H1)
    b1p = conv_b @ w1 + b1                                        # (1, H1)
    w3r = w3.T                                                    # (1, H2)
    w1p = w1p.astype(jnp.bfloat16)                                # tiny, resident

    # x stays f32 — the only data movement on x is the kernel's own DMA read.
    # Contiguous (N, C, L) -> (N, C*L) reshape is metadata-only.
    x2d = x.reshape(N, CL)

    # Lane-dense batch tile: multiple of 128; a single block when N is small.
    n_ceil = pl.cdiv(N, 128) * 128
    block_n = int(min(int(block_n), n_ceil))
    block_n = max(128, (block_n // 128) * 128)
    n_blocks = pl.cdiv(N, block_n)
    n_pad = n_blocks * block_n          # output padded to full blocks; tail sliced off

    vmem_limit = int(min(max(_vmem_budget_bytes(block_n, CL, H1, H2), 16 << 20),
                         120 << 20))

    out = pl.pallas_call(
        eprsann_kernel,
        out_shape=jax.ShapeDtypeStruct((1, n_pad), jnp.float32),
        grid_spec=pltpu.PrefetchScalarGridSpec(
            num_scalar_prefetch=0,
            grid=(n_blocks,),
            in_specs=[
                # Last block may run past N: Pallas issues a bounded boundary DMA;
                # garbage rows only affect output columns >= N (sliced off below).
                pl.BlockSpec((block_n, CL), lambda i: (i, 0)),    # x tile (f32)
                pl.BlockSpec((CL, H1), lambda i: (0, 0)),         # W1' (bf16)
                pl.BlockSpec((1, H1), lambda i: (0, 0)),          # b1'
                pl.BlockSpec((H1, H2), lambda i: (0, 0)),         # W2
                pl.BlockSpec((1, H2), lambda i: (0, 0)),          # b2
                pl.BlockSpec((1, H2), lambda i: (0, 0)),          # W3^T
                pl.BlockSpec((1, 1), lambda i: (0, 0)),           # b3
            ],
            out_specs=pl.BlockSpec((1, block_n), lambda i: (0, i)),
        ),
        compiler_params=pltpu.CompilerParams(
            dimension_semantics=("parallel",),
            vmem_limit_bytes=vmem_limit),
    )(x2d, w1p, b1p, w2, b2, w3r, b3)
    return out[0, :N]                                             # (N,)


def reference_fused_bf16(x, conv_w, conv_b, w1, b1, w2, b2, w3, b3):
    """Pure-JAX reference doing exactly the kernel's (folded, bf16-cast) math."""
    N, C, L = x.shape
    H1 = w1.shape[1]
    w1p = (conv_w[:, :, None] * w1[:, None, :]).reshape(C * L, H1).astype(jnp.bfloat16)
    b1p = conv_b @ w1 + b1
    x2d = x.reshape(N, C * L).astype(jnp.bfloat16)
    h1 = jnp.maximum(jnp.dot(x2d, w1p, preferred_element_type=jnp.float32) + b1p, 0.0)
    h2 = jnp.maximum(jnp.dot(h1, w2, preferred_element_type=jnp.float32) + b2, 0.0)
    return (jnp.dot(h2, w3, preferred_element_type=jnp.float32) + b3).reshape(-1)


def reference_unfused_f32(x, conv_w, conv_b, w1, b1, w2, b2, w3, b3):
    """Original (unfused) module math in f32 — sanity check of the folding."""
    y = jnp.sum(x * conv_w[None, :, :], axis=-1) + conv_b[0]
    h1 = jnp.maximum(y @ w1 + b1, 0.0)
    h2 = jnp.maximum(h1 @ w2 + b2, 0.0)
    return (h2 @ w3 + b3).reshape(-1)


if __name__ == "__main__":
    # Shapes consistent with the module's forward:
    IN_SIZE = 32          # channels C (== Linear input size)
    WING = 3
    K = 2 * WING + 1      # conv kernel size
    L = K                 # sequence length MUST equal K (valid conv -> len 1)
    H1, H2 = 64, 16
    N = 1000              # batch; not a multiple of 128 -> exercises the ragged tail

    key = jax.random.PRNGKey(0)
    ks = jax.random.split(key, 9)

    x = jax.random.normal(ks[0], (N, IN_SIZE, L), dtype=jnp.float32)

    # PyTorch-equivalent parameter shapes:
    #   Conv1d weight (C, 1, K) stored as (C, K); bias (C,) stored as (1, C)
    #   Linear weights (out, in) stored transposed as (in, out)
    conv_w = 0.1 * jax.random.normal(ks[1], (IN_SIZE, K), dtype=jnp.float32)
    conv_b = 0.1 * jax.random.normal(ks[2], (1, IN_SIZE), dtype=jnp.float32)
    w1 = 0.1 * jax.random.normal(ks[3], (IN_SIZE, H1), dtype=jnp.float32)
    b1 = 0.1 * jax.random.normal(ks[4], (1, H1), dtype=jnp.float32)
    w2 = 0.1 * jax.random.normal(ks[5], (H1, H2), dtype=jnp.float32)
    b2 = 0.1 * jax.random.normal(ks[6], (1, H2), dtype=jnp.float32)
    w3 = 0.1 * jax.random.normal(ks[7], (H2, 1), dtype=jnp.float32)
    b3 = 0.1 * jax.random.normal(ks[8], (1, 1), dtype=jnp.float32)

    # Default block_n=8192 is capped in the wrapper to a single 1024-wide
    # lane-dense block covering all N=1000 rows (single grid step).
    out = eprsann_forward(x, conv_w, conv_b, w1, b1, w2, b2, w3, b3)
    out = jax.block_until_ready(out)
    assert out.shape == (N,)

    # Tight check against a reference doing the identical folded/bf16 math
    # (also validates that the ragged boundary block doesn't pollute cols < N).
    ref_fused = reference_fused_bf16(x, conv_w, conv_b, w1, b1, w2, b2, w3, b3)
    assert jnp.allclose(out, ref_fused, atol=1e-4, rtol=1e-4), \
        "mismatch vs fused bf16 reference"

    # Loose check against the original f32 module math (bf16 quantization only).
    ref_f32 = reference_unfused_f32(x, conv_w, conv_b, w1, b1, w2, b2, w3, b3)
    assert jnp.allclose(out, ref_f32, atol=1e-2, rtol=1e-2), \
        "mismatch vs unfused f32 reference"

    print("KERNEL_OK")
</pallas_src>

<mosaic_0001>
module attributes {stable_mosaic.version = 11 : i64} {
  func.func @eprsann_kernel(%arg0: i32, %arg1: memref<1024x224xf32, #tpu.memory_space<vmem>>, %arg2: memref<224x64xbf16, #tpu.memory_space<vmem>>, %arg3: memref<1x64xf32, #tpu.memory_space<vmem>>, %arg4: memref<64x16xf32, #tpu.memory_space<vmem>>, %arg5: memref<1x16xf32, #tpu.memory_space<vmem>>, %arg6: memref<1x16xf32, #tpu.memory_space<vmem>>, %arg7: memref<1x1xf32, #tpu.memory_space<vmem>>, %arg8: memref<1x1024xf32, #tpu.memory_space<vmem>>) attributes {dimension_semantics = [#tpu.dimension_semantics<parallel>], iteration_bounds = array<i64: 1>, scalar_prefetch = 0 : i64, scratch_operands = 0 : i64, tpu.core_type = #tpu.core_type<tc>, window_params = [{transform_indices = @transform_0, window_bounds = array<i64: 1024, 224>}, {pipeline_mode = #tpu.pipeline_mode<synchronous>, transform_indices = @transform_1, window_bounds = array<i64: 224, 64>}, {pipeline_mode = #tpu.pipeline_mode<synchronous>, transform_indices = @transform_2, window_bounds = array<i64: 1, 64>}, {pipeline_mode = #tpu.pipeline_mode<synchronous>, transform_indices = @transform_3, window_bounds = array<i64: 64, 16>}, {pipeline_mode = #tpu.pipeline_mode<synchronous>, transform_indices = @transform_4, window_bounds = array<i64: 1, 16>}, {pipeline_mode = #tpu.pipeline_mode<synchronous>, transform_indices = @transform_5, window_bounds = array<i64: 1, 16>}, {pipeline_mode = #tpu.pipeline_mode<synchronous>, transform_indices = @transform_6, window_bounds = array<i64: 1, 1>}, {transform_indices = @transform_7, window_bounds = array<i64: 1, 1024>}]} {
    %c0 = arith.constant 0 : index
    %c0_0 = arith.constant 0 : index
    %0 = vector.load %arg1[%c0, %c0_0] : memref<1024x224xf32, #tpu.memory_space<vmem>>, vector<1024x224xf32>
    %1 = arith.truncf %0 : vector<1024x224xf32> to vector<1024x224xbf16>
    %c0_1 = arith.constant 0 : index
    %c0_2 = arith.constant 0 : index
    %2 = vector.load %arg2[%c0_1, %c0_2] : memref<224x64xbf16, #tpu.memory_space<vmem>>, vector<224x64xbf16>
    %cst = arith.constant dense<0.000000e+00> : vector<1024x64xf32>
    %3 = tpu.matmul %1, %2, %cst {dimension_numbers = #tpu.dot_dimension_numbers<[1], [0], [0], [1], [0, 0, 1, 1], [], []>} : vector<1024x224xbf16>, vector<224x64xbf16>, vector<1024x64xf32> -> vector<1024x64xf32>
    %c0_3 = arith.constant 0 : index
    %c0_4 = arith.constant 0 : index
    %4 = vector.load %arg3[%c0_3, %c0_4] : memref<1x64xf32, #tpu.memory_space<vmem>>, vector<1x64xf32>
    %5 = vector.broadcast %4 : vector<1x64xf32> to vector<1024x64xf32>
    %6 = arith.addf %3, %5 : vector<1024x64xf32>
    %cst_5 = arith.constant 0.000000e+00 : f32
    %7 = vector.broadcast %cst_5 : f32 to vector<1024x64xf32>
    %8 = arith.maximumf %6, %7 : vector<1024x64xf32>
    %c0_6 = arith.constant 0 : index
    %c0_7 = arith.constant 0 : index
    %9 = vector.load %arg4[%c0_6, %c0_7] : memref<64x16xf32, #tpu.memory_space<vmem>>, vector<64x16xf32>
    %cst_8 = arith.constant dense<0.000000e+00> : vector<1024x16xf32>
    %10 = tpu.matmul %8, %9, %cst_8 {dimension_numbers = #tpu.dot_dimension_numbers<[1], [0], [0], [1], [0, 0, 1, 1], [], []>} : vector<1024x64xf32>, vector<64x16xf32>, vector<1024x16xf32> -> vector<1024x16xf32>
    %c0_9 = arith.constant 0 : index
    %c0_10 = arith.constant 0 : index
    %11 = vector.load %arg5[%c0_9, %c0_10] : memref<1x16xf32, #tpu.memory_space<vmem>>, vector<1x16xf32>
    %12 = vector.broadcast %11 : vector<1x16xf32> to vector<1024x16xf32>
    %13 = arith.addf %10, %12 : vector<1024x16xf32>
    %cst_11 = arith.constant 0.000000e+00 : f32
    %14 = vector.broadcast %cst_11 : f32 to vector<1024x16xf32>
    %15 = arith.maximumf %13, %14 : vector<1024x16xf32>
    %c0_12 = arith.constant 0 : index
    %c0_13 = arith.constant 0 : index
    %16 = vector.load %arg6[%c0_12, %c0_13] : memref<1x16xf32, #tpu.memory_space<vmem>>, vector<1x16xf32>
    %17 = tpu.transpose %15, [1, 0] : vector<1024x16xf32> -> vector<16x1024xf32>
    %cst_14 = arith.constant dense<0.000000e+00> : vector<1x1024xf32>
    %18 = tpu.matmul %16, %17, %cst_14 {dimension_numbers = #tpu.dot_dimension_numbers<[1], [0], [0], [1], [0, 0, 1, 1], [], []>} : vector<1x16xf32>, vector<16x1024xf32>, vector<1x1024xf32> -> vector<1x1024xf32>
    %c0_15 = arith.constant 0 : index
    %c0_16 = arith.constant 0 : index
    %19 = vector.load %arg7[%c0_15, %c0_16] : memref<1x1xf32, #tpu.memory_space<vmem>>, vector<1x1xf32>
    %20 = vector.broadcast %19 : vector<1x1xf32> to vector<1x1024xf32>
    %21 = arith.addf %18, %20 : vector<1x1024xf32>
    %c0_17 = arith.constant 0 : index
    %c0_18 = arith.constant 0 : index
    %22 = vector.load %arg8[%c0_17, %c0_18] : memref<1x1024xf32, #tpu.memory_space<vmem>>, vector<1x1024xf32>
    tpu.vector_store %arg8[%c0_17, %c0_18], %21 {strides = array<i32>} : memref<1x1024xf32, #tpu.memory_space<vmem>>, vector<1x1024xf32>,
    return
  }
  func.func @transform_0(%arg0: i32) -> (i32, i32) {
    %c0_i32 = arith.constant 0 : i32
    %c0_i32_0 = arith.constant 0 : i32
    return %arg0, %c0_i32 : i32, i32
  }
  func.func @transform_1(%arg0: i32) -> (i32, i32) {
    %c0_i32 = arith.constant 0 : i32
    %c0_i32_0 = arith.constant 0 : i32
    %c0_i32_1 = arith.constant 0 : i32
    return %c0_i32, %c0_i32_0 : i32, i32
  }
  func.func @transform_2(%arg0: i32) -> (i32, i32) {
    %c0_i32 = arith.constant 0 : i32
    %c0_i32_0 = arith.constant 0 : i32
    %c0_i32_1 = arith.constant 0 : i32
    return %c0_i32, %c0_i32_0 : i32, i32
  }
  func.func @transform_3(%arg0: i32) -> (i32, i32) {
    %c0_i32 = arith.constant 0 : i32
    %c0_i32_0 = arith.constant 0 : i32
    %c0_i32_1 = arith.constant 0 : i32
    return %c0_i32, %c0_i32_0 : i32, i32
  }
  func.func @transform_4(%arg0: i32) -> (i32, i32) {
    %c0_i32 = arith.constant 0 : i32
    %c0_i32_0 = arith.constant 0 : i32
    %c0_i32_1 = arith.constant 0 : i32
    return %c0_i32, %c0_i32_0 : i32, i32
  }
  func.func @transform_5(%arg0: i32) -> (i32, i32) {
    %c0_i32 = arith.constant 0 : i32
    %c0_i32_0 = arith.constant 0 : i32
    %c0_i32_1 = arith.constant 0 : i32
    return %c0_i32, %c0_i32_0 : i32, i32
  }
  func.func @transform_6(%arg0: i32) -> (i32, i32) {
    %c0_i32 = arith.constant 0 : i32
    %c0_i32_0 = arith.constant 0 : i32
    %c0_i32_1 = arith.constant 0 : i32
    return %c0_i32, %c0_i32_0 : i32, i32
  }
  func.func @transform_7(%arg0: i32) -> (i32, i32) {
    %c0_i32 = arith.constant 0 : i32
    %c0_i32_0 = arith.constant 0 : i32
    return %c0_i32, %arg0 : i32, i32
  }
}

</mosaic_0001>

<bundles_post_ra>
// kernel: eprsann_forward.1
= control target key start
LH: loop header
LB: loop body
LE: loop exit
PB: predicated region body
PF: predicated region fallthrough
CT: control target
= control target key end

     0   :  { %s6173_s0 = inlined_call_operand.vmem [shape: f32[1000,224], index: 0, kind: input, shape index: {}]   ;;  %s6174_s1 = inlined_call_operand.vmem [shape: bf16[224,64], index: 1, kind: input, shape index: {}]   ;;  %s6175_s2 = inlined_call_operand.vmem [shape: f32[1,64], index: 2, kind: input, shape index: {}]   ;;  %s6176_s3 = inlined_call_operand.vmem [shape: f32[64,16], index: 3, kind: input, shape index: {}]   ;;  %s6177_s4 = inlined_call_operand.vmem [shape: f32[1,16], index: 4, kind: input, shape index: {}]   ;;  %s6178_s5 = inlined_call_operand.vmem [shape: f32[1,16], index: 5, kind: input, shape index: {}]   ;;  %s6179_s6 = inlined_call_operand.<no memory space> [shape: f32[1,1], index: 6, kind: input, shape index: {}]   ;;  %s6180_s7 = inlined_call_operand.hbm [shape: f32[1,1024], index: 7, kind: output, shape index: {}]  }
   0x1   :  { %v12_v0 = vstv %s6179_s6 }
   0x2   :  { %13 = vst [vmem:[#allocation2] sm:$0x1] %v12_v0 }
   0x3   :  { %v4448_v1 = vld [vmem:[%s6174_s1] sm:$0xff]   ;;  %v4489_v2 = vmov 0   ;;  %v4449_v3 = vld [vmem:[%s6174_s1 + $0x8] sm:$0xff]   ;;  %v4450_v4 = vld [vmem:[%s6174_s1 + $0x10] sm:$0xff]   ;;  %vm533_vm0 = vcmask 785408  }
   0x4   :  { %726 = vmatprep.subr.bf16.mxu0 %v4489_v2  ;;  %4416 = vmatprep.subr.bf16.mxu1 %v4489_v2  ;;  %v4451_v5 = vld [vmem:[%s6174_s1 + $0x18] sm:$0xff]   ;;  %v4452_v6 = vld [vmem:[%s6174_s1 + $0x20] sm:$0xff]   ;;  %v31_v7 = vld [vmem:[%s6173_s0 + $0x8] sm:$0xff] }
   0x5   :  { %727 = vmatpush1.bf16.msra.mxu0 %v4448_v1  ;;  %4430 = vmatpush1.bf16.msra.mxu1 %v4448_v1  ;;  %v33_v8 = vld [vmem:[%s6173_s0 + $0x18] sm:$0xff]  ;;  %v4453_v10 = vld [vmem:[%s6174_s1 + $0x28] sm:$0xff]   ;;  %v4454_v11 = vld [vmem:[%s6174_s1 + $0x30] sm:$0xff]  }
   0x6   :  { %728 = vmatprep.subr.bf16.mxu0 %v4489_v2  ;;  %4417 = vmatprep.subr.bf16.mxu1 %v4489_v2  ;;  %v287_v9 = vpack.c.bf16 %v33_v8, %v31_v7  ;;  %v4455_v12 = vld [vmem:[%s6174_s1 + $0x38] sm:$0xff]   ;;  %v4456_v13 = vld [vmem:[%s6174_s1 + $0x40] sm:$0xff]  }
   0x7   :  { %4447 = vset.pattern.permute.xlu0 %v4489_v2 }
   0x8   :  { %3403 = vmatprep.mubr.msk.bf16.mxu0 %vm533_vm0, %v287_v9 }
   0x9   :  { %729 = vmatpush1.bf16.msra.mxu0 %v4449_v3  ;;  %4431 = vmatpush1.bf16.msra.mxu1 %v4449_v3 }
   0xa   :  { %730 = vmatprep.subr.bf16.mxu0 %v4489_v2  ;;  %4418 = vmatprep.subr.bf16.mxu1 %v4489_v2 }
   0xd   :  { %731 = vmatpush1.bf16.msra.mxu0 %v4450_v4  ;;  %4432 = vmatpush1.bf16.msra.mxu1 %v4450_v4 }
   0xe   :  { %732 = vmatprep.subr.bf16.mxu0 %v4489_v2  ;;  %4419 = vmatprep.subr.bf16.mxu1 %v4489_v2 }
  0x11   :  { %733 = vmatpush1.bf16.msra.mxu0 %v4451_v5  ;;  %4433 = vmatpush1.bf16.msra.mxu1 %v4451_v5 }
  0x12   :  { %734 = vmatprep.subr.bf16.mxu0 %v4489_v2  ;;  %4420 = vmatprep.subr.bf16.mxu1 %v4489_v2 }
  0x15   :  { %735 = vmatpush1.bf16.msra.mxu0 %v4452_v6  ;;  %4434 = vmatpush1.bf16.msra.mxu1 %v4452_v6 }
  0x16   :  { %736 = vmatprep.subr.bf16.mxu0 %v4489_v2  ;;  %4421 = vmatprep.subr.bf16.mxu1 %v4489_v2 }
  0x19   :  { %737 = vmatpush1.bf16.msra.mxu0 %v4453_v10  ;;  %4435 = vmatpush1.bf16.msra.mxu1 %v4453_v10 }
  0x1a   :  { %738 = vmatprep.subr.bf16.mxu0 %v4489_v2  ;;  %4422 = vmatprep.subr.bf16.mxu1 %v4489_v2 }
  0x1d   :  { %739 = vmatpush1.bf16.msra.mxu0 %v4454_v11  ;;  %4436 = vmatpush1.bf16.msra.mxu1 %v4454_v11 }
  0x1e   :  { %740 = vmatprep.subr.bf16.mxu0 %v4489_v2  ;;  %4423 = vmatprep.subr.bf16.mxu1 %v4489_v2 }
  0x21   :  { %741 = vmatpush1.bf16.msra.mxu0 %v4455_v12  ;;  %4437 = vmatpush1.bf16.msra.mxu1 %v4455_v12 }
  0x22   :  { %742 = vmatprep.subr.bf16.mxu0 %v4489_v2  ;;  %4424 = vmatprep.subr.bf16.mxu1 %v4489_v2 }
  0x23   :  { %14 = vsyncpa [#allocation4], 0  ;;  %v4457_v14 = vld [vmem:[%s6174_s1 + $0x48] sm:$0xff]   ;;  %v4458_v15 = vld [vmem:[%s6174_s1 + $0x50] sm:$0xff]   ;;  %vm1414_vm1 = vcmask 523264   ;;  %vm2643_vm2 = vcmask 130048  }
  0x24   :  { %v4459_v16 = vld [vmem:[%s6174_s1 + $0x58] sm:$0xff]   ;;  %v4460_v17 = vld [vmem:[%s6174_s1 + $0x60] sm:$0xff]   ;;  %v4461_v18 = vld [vmem:[%s6174_s1 + $0x68] sm:$0xff]  }
  0x25   :  { %743 = vmatpush1.bf16.msra.mxu0 %v4456_v13  ;;  %4438 = vmatpush1.bf16.msra.mxu1 %v4456_v13  ;;  %v30_v19 = vld [vmem:[%s6173_s0] sm:$0xff]  ;;  %v32_v20 = vld [vmem:[%s6173_s0 + $0x10] sm:$0xff]  ;;  %v35_v21 = vld [vmem:[%s6173_s0 + $0x28] sm:$0xff] }
  0x26   :  { %744 = vmatprep.subr.bf16.mxu0 %v4489_v2  ;;  %4425 = vmatprep.subr.bf16.mxu1 %v4489_v2  ;;  %v37_v22 = vld [vmem:[%s6173_s0 + $0x38] sm:$0xff]  ;;  %v286_v23 = vpack.c.bf16 %v32_v20, %v30_v19  ;;  %v34_v25 = vld [vmem:[%s6173_s0 + $0x20] sm:$0xff]  ;;  %v36_v26 = vld [vmem:[%s6173_s0 + $0x30] sm:$0xff] }
  0x27   :  { %v289_v24 = vpack.c.bf16 %v37_v22, %v35_v21  ;;  %v39_v27 = vld [vmem:[%s6173_s0 + $0x48] sm:$0xff]  ;;  %v41_v28 = vld [vmem:[%s6173_s0 + $0x58] sm:$0xff]  ;;  %v288_v29 = vpack.c.bf16 %v36_v26, %v34_v25  ;;  %v38_v31 = vld [vmem:[%s6173_s0 + $0x40] sm:$0xff] }
  0x28   :  { %v291_v30 = vpack.c.bf16 %v41_v28, %v39_v27  ;;  %v40_v32 = vld [vmem:[%s6173_s0 + $0x50] sm:$0xff]  ;;  %v43_v33 = vld [vmem:[%s6173_s0 + $0x68] sm:$0xff]  ;;  %v45_v34 = vld [vmem:[%s6173_s0 + $0x78] sm:$0xff] }
  0x29   :  { %745 = vmatpush1.bf16.msra.mxu0 %v4457_v14  ;;  %4439 = vmatpush1.bf16.msra.mxu1 %v4457_v14  ;;  %v290_v35 = vpack.c.bf16 %v40_v32, %v38_v31  ;;  %v293_v36 = vpack.c.bf16 %v45_v34, %v43_v33  ;;  %v42_v37 = vld [vmem:[%s6173_s0 + $0x60] sm:$0xff]  ;;  %v44_v38 = vld [vmem:[%s6173_s0 + $0x70] sm:$0xff]  ;;  %v47_v39 = vld [vmem:[%s6173_s0 + $0x88] sm:$0xff] }
  0x2a   :  { %746 = vmatprep.subr.bf16.mxu0 %v4489_v2  ;;  %4426 = vmatprep.subr.bf16.mxu1 %v4489_v2  ;;  %v49_v40 = vld [vmem:[%s6173_s0 + $0x98] sm:$0xff]  ;;  %v292_v41 = vpack.c.bf16 %v44_v38, %v42_v37  ;;  %v46_v43 = vld [vmem:[%s6173_s0 + $0x80] sm:$0xff]  ;;  %v48_v44 = vld [vmem:[%s6173_s0 + $0x90] sm:$0xff] }
  0x2b   :  { %v295_v42 = vpack.c.bf16 %v49_v40, %v47_v39  ;;  %v51_v45 = vld [vmem:[%s6173_s0 + $0xa8] sm:$0xff]  ;;  %v53_v46 = vld [vmem:[%s6173_s0 + $0xb8] sm:$0xff]  ;;  %v294_v47 = vpack.c.bf16 %v48_v44, %v46_v43  ;;  %v50_v49 = vld [vmem:[%s6173_s0 + $0xa0] sm:$0xff] }
  0x2c   :  { %v297_v48 = vpack.c.bf16 %v53_v46, %v51_v45  ;;  %v52_v50 = vld [vmem:[%s6173_s0 + $0xb0] sm:$0xff]  ;;  %v55_v51 = vld [vmem:[%s6173_s0 + $0xc8] sm:$0xff]  ;;  %v57_v52 = vld [vmem:[%s6173_s0 + $0xd8] sm:$0xff] }
  0x2d   :  { %747 = vmatpush1.bf16.msra.mxu0 %v4458_v15  ;;  %4440 = vmatpush1.bf16.msra.mxu1 %v4458_v15  ;;  %v296_v53 = vpack.c.bf16 %v52_v50, %v50_v49  ;;  %v299_v54 = vpack.c.bf16 %v57_v52, %v55_v51  ;;  %v54_v55 = vld [vmem:[%s6173_s0 + $0xc0] sm:$0xff]  ;;  %v56_v56 = vld [vmem:[%s6173_s0 + $0xd0] sm:$0xff]  ;;  %v59_v57 = vld [vmem:[%s6173_s0 + $0xe8] sm:$0xff] }
  0x2e   :  { %748 = vmatprep.subr.bf16.mxu0 %v4489_v2  ;;  %4427 = vmatprep.subr.bf16.mxu1 %v4489_v2  ;;  %v61_v58 = vld [vmem:[%s6173_s0 + $0xf8] sm:$0xff]  ;;  %v298_v59 = vpack.c.bf16 %v56_v56, %v54_v55  ;;  %v58_v61 = vld [vmem:[%s6173_s0 + $0xe0] sm:$0xff]  ;;  %v60_v62 = vld [vmem:[%s6173_s0 + $0xf0] sm:$0xff] }
  0x2f   :  { %v301_v60 = vpack.c.bf16 %v61_v58, %v59_v57  ;;  %v63_v63 = vld [vmem:[%s6173_s0 + $0x108] sm:$0xff]  ;;  %v65_v0 = vld [vmem:[%s6173_s0 + $0x118] sm:$0xff]  ;;  %v300_v1 = vpack.c.bf16 %v60_v62, %v58_v61  ;;  %v62_v3 = vld [vmem:[%s6173_s0 + $0x100] sm:$0xff] }
  0x30   :  { %v64_v4 = vld [vmem:[%s6173_s0 + $0x110] sm:$0xff]  ;;  %v67_v5 = vld [vmem:[%s6173_s0 + $0x128] sm:$0xff]  ;;  %v69_v6 = vld [vmem:[%s6173_s0 + $0x138] sm:$0xff] }
  0x31   :  { %749 = vmatpush1.bf16.msra.mxu0 %v4459_v16  ;;  %4441 = vmatpush1.bf16.msra.mxu1 %v4459_v16  ;;  %v302_v7 = vpack.c.bf16 %v64_v4, %v62_v3  ;;  %v305_v8 = vpack.c.bf16 %v69_v6, %v67_v5  ;;  %v275_v9 = vld [vmem:[%s6173_s0 + $0x7a8] sm:$0xff]  ;;  %v277_v10 = vld [vmem:[%s6173_s0 + $0x7b8] sm:$0xff]  ;;  %v274_v12 = vld [vmem:[%s6173_s0 + $0x7a0] sm:$0xff] }
  0x32   :  { %750 = vmatprep.subr.bf16.mxu0 %v4489_v2  ;;  %4428 = vmatprep.subr.bf16.mxu1 %v4489_v2  ;;  %v409_v11 = vpack.c.bf16 %v277_v10, %v275_v9  ;;  %v276_v13 = vld [vmem:[%s6173_s0 + $0x7b0] sm:$0xff]  ;;  %v66_v15 = vld [vmem:[%s6173_s0 + $0x120] sm:$0xff]  ;;  %v279_v21 = vld [vmem:[%s6173_s0 + $0x7c8] sm:$0xff] }
  0x33   :  { %v408_v14 = vpack.c.bf16 %v276_v13, %v274_v12  ;;  %v68_v16 = vld [vmem:[%s6173_s0 + $0x130] sm:$0xff]  ;;  %v281_v22 = vld [vmem:[%s6173_s0 + $0x7d8] sm:$0xff]  ;;  %v1399_v26 = vld [vmem:[%s6176_s3] sm:$0xff] }
  0x34   :  { %3464 = vmatprep.mubr.msk.bf16.mxu1 %vm533_vm0, %v409_v11  ;;  %v304_v19 = vpack.c.bf16 %v68_v16, %v66_v15  ;;  %v280_v25 = vld [vmem:[%s6173_s0 + $0x7d0] sm:$0xff]  ;;  %v1400_v28 = vld [vmem:[%s6176_s3 + $0x8] sm:$0xff]  ;;  %v70_v31 = vld [vmem:[%s6173_s0 + $0x140] sm:$0xff] }
  0x35   :  { %751 = vmatpush1.bf16.msra.mxu0 %v4460_v17  ;;  %4442 = vmatpush1.bf16.msra.mxu1 %v4460_v17  ;;  %v71_v17 = vld [vmem:[%s6173_s0 + $0x148] sm:$0xff]  ;;  %v72_v32 = vld [vmem:[%s6173_s0 + $0x150] sm:$0xff]  ;;  %v4208_v33 = vpack.c.bf16 %v1400_v28, %v1399_v26  ;;  %v285_v40 = vld [vmem:[%s6173_s0 + $0x7f8] sm:$0xff] }
  0x36   :  { %752 = vmatprep.subr.bf16.mxu0 %v4489_v2  ;;  %4429 = vmatprep.subr.bf16.mxu1 %v4489_v2  ;;  %v303_v2 = vpack.c.bf16 %v65_v0, %v63_v63  ;;  %v306_v37 = vpack.c.bf16 %v72_v32, %v70_v31  ;;  %v283_v39 = vld [vmem:[%s6173_s0 + $0x7e8] sm:$0xff]  ;;  %v284_v43 = vld [vmem:[%s6173_s0 + $0x7f0] sm:$0xff]  ;;  %v1403_v44 = vld [vmem:[%s6176_s3 + $0x20] sm:$0xff] }
  0x37   :  { %v1404_v46 = vld [vmem:[%s6176_s3 + $0x28] sm:$0xff]  ;;  %v81_v51 = vld [vmem:[%s6173_s0 + $0x198] sm:$0xff]  ;;  %v1405_v52 = vld [vmem:[%s6176_s3 + $0x30] sm:$0xff] }
  0x38   :  { %v4216_v49 = vpack.c.bf16 %v1404_v46, %v1403_v44  ;;  %v79_v50 = vld [vmem:[%s6173_s0 + $0x188] sm:$0xff]  ;;  %v78_v57 = vld [vmem:[%s6173_s0 + $0x180] sm:$0xff]  ;;  %v80_v58 = vld [vmem:[%s6173_s0 + $0x190] sm:$0xff] }
  0x39   :  { %753 = vmatpush1.bf16.msra.mxu0 %v4461_v18  ;;  %4443 = vmatpush1.bf16.msra.mxu1 %v4461_v18  ;;  %v73_v18 = vld [vmem:[%s6173_s0 + $0x158] sm:$0xff]  ;;  %v311_v56 = vpack.c.bf16 %v81_v51, %v79_v50  ;;  %v310_v61 = vpack.c.bf16 %v80_v58, %v78_v57  ;;  %v82_v63 = vld [vmem:[%s6173_s0 + $0x1a0] sm:$0xff]  ;;  %v84_v0 = vld [vmem:[%s6173_s0 + $0x1b0] sm:$0xff] }
  0x3a   :  { %v307_v20 = vpack.c.bf16 %v73_v18, %v71_v17  ;;  %4209 = vmatprep.subr.bf16.mxu1 %v4208_v33  ;;  %v312_v3 = vpack.c.bf16 %v84_v0, %v82_v63  ;;  %v86_v5 = vld [vmem:[%s6173_s0 + $0x1c0] sm:$0xff]  ;;  %v88_v6 = vld [vmem:[%s6173_s0 + $0x1d0] sm:$0xff]  ;;  %v95_v13 = vld [vmem:[%s6173_s0 + $0x208] sm:$0xff] }
  0x3b   :  { %v314_v9 = vpack.c.bf16 %v88_v6, %v86_v5  ;;  %v90_v11 = vld [vmem:[%s6173_s0 + $0x1e0] sm:$0xff]  ;;  %v92_v12 = vld [vmem:[%s6173_s0 + $0x1f0] sm:$0xff]  ;;  %v105_v26 = vld [vmem:[%s6173_s0 + $0x258] sm:$0xff] }
  0x3c   :  { %759 = vmatmul.mubr.bf16.vlgmr.msra.gmra.mrb[0].mxu0 %v286_v23  ;;  %1247 = vmatmul.mubr.bf16.vlgmr.msra.gmra.mrb[0].mxu1 %v408_v14  ;;  %v411_v23 = vpack.c.bf16 %v281_v22, %v279_v21  ;;  %v97_v14 = vld [vmem:[%s6173_s0 + $0x218] sm:$0xff]  ;;  %v316_v15 = vpack.c.bf16 %v92_v12, %v90_v11  ;;  %v94_v17 = vld [vmem:[%s6173_s0 + $0x200] sm:$0xff]  ;;  %v96_v18 = vld [vmem:[%s6173_s0 + $0x210] sm:$0xff] }
  0x3d   :  { %3404 = vmatprep.mubr.msk.bf16.mxu0 %vm533_vm0, %v289_v24  ;;  %v278_v24 = vld [vmem:[%s6173_s0 + $0x7c0] sm:$0xff]  ;;  %4211 = vmatpush3.bf16.msra.mxu1 %v4208_v33  ;;  %v319_v16 = vpack.c.bf16 %v97_v14, %v95_v13  ;;  %v318_v21 = vpack.c.bf16 %v96_v18, %v94_v17  ;;  %v107_v31 = vld [vmem:[%s6173_s0 + $0x268] sm:$0xff]  ;;  %v109_v32 = vld [vmem:[%s6173_s0 + $0x278] sm:$0xff] }
  0x3e   :  { %v410_v27 = vpack.c.bf16 %v280_v25, %v278_v24  ;;  %3465 = vmatprep.mubr.msk.bf16.mxu1 %vm533_vm0, %v411_v23  ;;  %v98_v23 = vld [vmem:[%s6173_s0 + $0x220] sm:$0xff]  ;;  %v100_v24 = vld [vmem:[%s6173_s0 + $0x230] sm:$0xff]  ;;  %v103_v25 = vld [vmem:[%s6173_s0 + $0x248] sm:$0xff] }
  0x3f   :  { %v323_v28 = vpack.c.bf16 %v105_v26, %v103_v25  ;;  %v117_v44 = vld [vmem:[%s6173_s0 + $0x2b8] sm:$0xff]  ;;  %v134_v13 = vld [vmem:[%s6173_s0 + $0x340] sm:$0xff]  ;;  %v136_v14 = vld [vmem:[%s6173_s0 + $0x350] sm:$0xff] }
  0x40   :  { %v121_v50 = vld [vmem:[%s6173_s0 + $0x2d8] sm:$0xff]  ;;  %v338_v17 = vpack.c.bf16 %v136_v14, %v134_v13  ;;  %v156_v13 = vld [vmem:[%s6173_s0 + $0x3f0] sm:$0xff]  ;;  %v159_v14 = vld [vmem:[%s6173_s0 + $0x408] sm:$0xff] }
  0x41   :  { %vm5669_vm3 = vmpackc.low %vm2643_vm2, %vm2643_vm2 }
  0x44   :  { %767 = vmatmul.mubr.bf16.gmra.mrb[4].mxu0 %v288_v29  ;;  %v1401_v29 = vld [vmem:[%s6176_s3 + $0x10] sm:$0xff]  ;;  %1255 = vmatmul.mubr.bf16.gmra.mrb[4].mxu1 %v410_v27  ;;  %v320_v27 = vpack.c.bf16 %v100_v24, %v98_v23  ;;  %v145_v23 = vld [vmem:[%s6173_s0 + $0x398] sm:$0xff] }
  0x45   :  { %3405 = vmatprep.mubr.msk.bf16.mxu0 %vm533_vm0, %v291_v30  ;;  %v1402_v30 = vld [vmem:[%s6176_s3 + $0x18] sm:$0xff] }
  0x46   :  { %v4212_v34 = vpack.c.bf16 %v1402_v30, %v1401_v29  ;;  %v102_v29 = vld [vmem:[%s6173_s0 + $0x240] sm:$0xff]  ;;  %v104_v30 = vld [vmem:[%s6173_s0 + $0x250] sm:$0xff] }
  0x47   :  { %v322_v33 = vpack.c.bf16 %v104_v30, %v102_v29 }
  0x48   :  { %4213 = vmatprep.subr.bf16.mxu1 %v4212_v34 }
  0x49   :  { %4215 = vmatpush3.bf16.msra.mxu1 %v4212_v34  ;;  %v325_v34 = vpack.c.bf16 %v109_v32, %v107_v31 }
  0x4a   :  { %4217 = vmatprep.subr.bf16.mxu1 %v4216_v49 }
  0x4c   :  { %775 = vmatmul.mubr.bf16.gmra.mrb[8].mxu0 %v290_v35  ;;  %v75_v35 = vld [vmem:[%s6173_s0 + $0x168] sm:$0xff] }
  0x4d   :  { %3406 = vmatprep.mubr.msk.bf16.mxu0 %vm533_vm0, %v293_v36  ;;  %v77_v36 = vld [vmem:[%s6173_s0 + $0x178] sm:$0xff]  ;;  %4219 = vmatpush3.bf16.msra.mxu1 %v4216_v49  ;;  %v119_v49 = vld [vmem:[%s6173_s0 + $0x2c8] sm:$0xff] }
  0x4e   :  { %v309_v38 = vpack.c.bf16 %v77_v36, %v75_v35  ;;  %v106_v35 = vld [vmem:[%s6173_s0 + $0x260] sm:$0xff]  ;;  %v108_v36 = vld [vmem:[%s6173_s0 + $0x270] sm:$0xff] }
  0x54   :  { %783 = vmatmul.mubr.bf16.gmra.mrb[12].mxu0 %v292_v41  ;;  %v413_v41 = vpack.c.bf16 %v285_v40, %v283_v39  ;;  %v324_v39 = vpack.c.bf16 %v108_v36, %v106_v35  ;;  %v144_v35 = vld [vmem:[%s6173_s0 + $0x390] sm:$0xff]  ;;  %v147_v36 = vld [vmem:[%s6173_s0 + $0x3a8] sm:$0xff] }
  0x55   :  { %3407 = vmatprep.mubr.msk.bf16.mxu0 %vm533_vm0, %v295_v42  ;;  %v282_v42 = vld [vmem:[%s6173_s0 + $0x7e0] sm:$0xff] }
  0x56   :  { %v412_v45 = vpack.c.bf16 %v284_v43, %v282_v42  ;;  %3466 = vmatprep.mubr.msk.bf16.mxu1 %vm533_vm0, %v413_v41  ;;  %v110_v41 = vld [vmem:[%s6173_s0 + $0x280] sm:$0xff]  ;;  %v112_v42 = vld [vmem:[%s6173_s0 + $0x290] sm:$0xff]  ;;  %v115_v43 = vld [vmem:[%s6173_s0 + $0x2a8] sm:$0xff] }
  0x57   :  { %v329_v46 = vpack.c.bf16 %v117_v44, %v115_v43 }
  0x58   :  { %1263 = vmatmul.mubr.bf16.gmra.mrb[8].mxu1 %v412_v45  ;;  %v326_v45 = vpack.c.bf16 %v112_v42, %v110_v41 }
  0x5c   :  { %791 = vmatmul.mubr.bf16.gmra.mrb[16].mxu0 %v294_v47  ;;  %v74_v47 = vld [vmem:[%s6173_s0 + $0x160] sm:$0xff] }
  0x5d   :  { %3408 = vmatprep.mubr.msk.bf16.mxu0 %vm533_vm0, %v297_v48  ;;  %v76_v48 = vld [vmem:[%s6173_s0 + $0x170] sm:$0xff] }
  0x64   :  { %799 = vmatmul.mubr.bf16.gmra.mrb[20].mxu0 %v296_v53  ;;  %v1406_v53 = vld [vmem:[%s6176_s3 + $0x38] sm:$0xff] }
  0x65   :  { %3409 = vmatprep.mubr.msk.bf16.mxu0 %vm533_vm0, %v299_v54  ;;  %v308_v54 = vpack.c.bf16 %v76_v48, %v74_v47  ;;  %v4220_v55 = vpack.c.bf16 %v1406_v53, %v1405_v52  ;;  %v114_v47 = vld [vmem:[%s6173_s0 + $0x2a0] sm:$0xff]  ;;  %v116_v48 = vld [vmem:[%s6173_s0 + $0x2b0] sm:$0xff]  ;;  %v331_v52 = vpack.c.bf16 %v121_v50, %v119_v49  ;;  %v151_v50 = vld [vmem:[%s6173_s0 + $0x3c8] sm:$0xff] }
  0x66   :  { %v328_v51 = vpack.c.bf16 %v116_v48, %v114_v47  ;;  %v118_v53 = vld [vmem:[%s6173_s0 + $0x2c0] sm:$0xff]  ;;  %v148_v49 = vld [vmem:[%s6173_s0 + $0x3b0] sm:$0xff] }
  0x67   :  { %4221 = vmatprep.subr.bf16.mxu1 %v4220_v55  ;;  %v146_v48 = vld [vmem:[%s6173_s0 + $0x3a0] sm:$0xff] }
  0x68   :  { %4223 = vmatpush3.bf16.msra.mxu1 %v4220_v55  ;;  %v123_v55 = vld [vmem:[%s6173_s0 + $0x2e8] sm:$0xff] }
  0x6c   :  { %807 = vmatmul.mubr.bf16.gmra.mrb[24].mxu0 %v298_v59  ;;  %v83_v59 = vld [vmem:[%s6173_s0 + $0x1a8] sm:$0xff] }
  0x6d   :  { %3410 = vmatprep.mubr.msk.bf16.mxu0 %vm533_vm0, %v301_v60  ;;  %v85_v60 = vld [vmem:[%s6173_s0 + $0x1b8] sm:$0xff] }
  0x6e   :  { %v313_v62 = vpack.c.bf16 %v85_v60, %v83_v59  ;;  %v122_v59 = vld [vmem:[%s6173_s0 + $0x2e0] sm:$0xff]  ;;  %v124_v60 = vld [vmem:[%s6173_s0 + $0x2f0] sm:$0xff] }
  0x6f   :  { %v332_v63 = vpack.c.bf16 %v124_v60, %v122_v59 }
  0x74   :  { %815 = vmatmul.mubr.bf16.gmra.mrb[28].mxu0 %v300_v1  ;;  %v87_v1 = vld [vmem:[%s6173_s0 + $0x1c8] sm:$0xff] }
  0x75   :  { %3411 = vmatprep.mubr.msk.bf16.mxu0 %vm533_vm0, %v303_v2  ;;  %v89_v2 = vld [vmem:[%s6173_s0 + $0x1d8] sm:$0xff] }
  0x76   :  { %v315_v4 = vpack.c.bf16 %v89_v2, %v87_v1  ;;  %v126_v1 = vld [vmem:[%s6173_s0 + $0x300] sm:$0xff]  ;;  %v128_v2 = vld [vmem:[%s6173_s0 + $0x310] sm:$0xff] }
  0x77   :  { %v334_v5 = vpack.c.bf16 %v128_v2, %v126_v1  ;;  %v157_v1 = vld [vmem:[%s6173_s0 + $0x3f8] sm:$0xff] }
  0x7c   :  { %823 = vmatmul.mubr.bf16.gmra.mrb[32].mxu0 %v302_v7  ;;  %v91_v7 = vld [vmem:[%s6173_s0 + $0x1e8] sm:$0xff] }
  0x7d   :  { %3412 = vmatprep.mubr.msk.bf16.mxu0 %vm533_vm0, %v305_v8  ;;  %v93_v8 = vld [vmem:[%s6173_s0 + $0x1f8] sm:$0xff] }
  0x7e   :  { %v317_v10 = vpack.c.bf16 %v93_v8, %v91_v7  ;;  %v130_v7 = vld [vmem:[%s6173_s0 + $0x320] sm:$0xff]  ;;  %v132_v8 = vld [vmem:[%s6173_s0 + $0x330] sm:$0xff] }
  0x7f   :  { %v336_v11 = vpack.c.bf16 %v132_v8, %v130_v7 }
  0x84   :  { %831 = vmatmul.mubr.bf16.gmra.mrb[36].mxu0 %v304_v19  ;;  %v99_v19 = vld [vmem:[%s6173_s0 + $0x228] sm:$0xff] }
  0x85   :  { %3413 = vmatprep.mubr.msk.bf16.mxu0 %vm533_vm0, %v307_v20  ;;  %v101_v20 = vld [vmem:[%s6173_s0 + $0x238] sm:$0xff] }
  0x86   :  { %v321_v22 = vpack.c.bf16 %v101_v20, %v99_v19  ;;  %v5029_v19 = vld [vmem:[%s6175_s2] ss:$0 sm:$0xff] }
  0x87   :  { %v138_v20 = vld [vmem:[%s6173_s0 + $0x360] sm:$0xff] }
  0x8c   :  { %839 = vmatmul.mubr.bf16.gmra.mrb[40].mxu0 %v306_v37  ;;  %v111_v37 = vld [vmem:[%s6173_s0 + $0x288] sm:$0xff] }
  0x8d   :  { %3414 = vmatprep.mubr.msk.bf16.mxu0 %vm533_vm0, %v309_v38  ;;  %v113_v38 = vld [vmem:[%s6173_s0 + $0x298] sm:$0xff] }
  0x8e   :  { %v327_v40 = vpack.c.bf16 %v113_v38, %v111_v37  ;;  %v149_v37 = vld [vmem:[%s6173_s0 + $0x3b8] sm:$0xff] }
  0x8f   :  { %v345_v43 = vpack.c.bf16 %v149_v37, %v147_v36 }
  0x94   :  { %847 = vmatmul.mubr.bf16.gmra.mrb[44].mxu0 %v308_v54  ;;  %v120_v54 = vld [vmem:[%s6173_s0 + $0x2d0] sm:$0xff] }
  0x95   :  { %3415 = vmatprep.mubr.msk.bf16.mxu0 %vm533_vm0, %v311_v56  ;;  %v125_v56 = vld [vmem:[%s6173_s0 + $0x2f8] sm:$0xff]  ;;  %v330_v57 = vpack.c.bf16 %v120_v54, %v118_v53 }
  0x96   :  { %v333_v58 = vpack.c.bf16 %v125_v56, %v123_v55  ;;  %v344_v55 = vpack.c.bf16 %v148_v49, %v146_v48 }
  0x9c   :  { %855 = vmatmul.mubr.bf16.gmra.mrb[48].mxu0 %v310_v61  ;;  %v127_v61 = vld [vmem:[%s6173_s0 + $0x308] sm:$0xff] }
  0x9d   :  { %3416 = vmatprep.mubr.msk.bf16.mxu0 %vm533_vm0, %v313_v62  ;;  %v129_v62 = vld [vmem:[%s6173_s0 + $0x318] sm:$0xff] }
  0x9e   :  { %v335_v0 = vpack.c.bf16 %v129_v62, %v127_v61  ;;  %v150_v62 = vld [vmem:[%s6173_s0 + $0x3c0] sm:$0xff] }
  0xa4   :  { %863 = vmatmul.mubr.bf16.gmra.mrb[52].mxu0 %v312_v3  ;;  %v131_v3 = vld [vmem:[%s6173_s0 + $0x328] sm:$0xff] }
  0xa5   :  { %3417 = vmatprep.mubr.msk.bf16.mxu0 %vm533_vm0, %v315_v4  ;;  %v133_v4 = vld [vmem:[%s6173_s0 + $0x338] sm:$0xff] }
  0xa6   :  { %v337_v6 = vpack.c.bf16 %v133_v4, %v131_v3 }
  0xac   :  { %871 = vmatmul.mubr.bf16.gmra.mrb[56].mxu0 %v314_v9  ;;  %v135_v9 = vld [vmem:[%s6173_s0 + $0x348] sm:$0xff] }
  0xad   :  { %3418 = vmatprep.mubr.msk.bf16.mxu0 %vm533_vm0, %v317_v10  ;;  %v137_v10 = vld [vmem:[%s6173_s0 + $0x358] sm:$0xff] }
  0xae   :  { %v339_v12 = vpack.c.bf16 %v137_v10, %v135_v9 }
  0xb4   :  { %879 = vmatmul.mubr.bf16.gmra.mrb[60].mxu0 %v316_v15  ;;  %v139_v15 = vld [vmem:[%s6173_s0 + $0x368] sm:$0xff] }
  0xb5   :  { %3419 = vmatprep.mubr.msk.bf16.mxu0 %vm533_vm0, %v319_v16  ;;  %v141_v16 = vld [vmem:[%s6173_s0 + $0x378] sm:$0xff] }
  0xb6   :  { %v341_v18 = vpack.c.bf16 %v141_v16, %v139_v15  ;;  %v161_v15 = vld [vmem:[%s6173_s0 + $0x418] sm:$0xff] }
  0xbc   :  { %887 = vmatmul.mubr.bf16.gmra.mrb[64].mxu0 %v318_v21  ;;  %v140_v21 = vld [vmem:[%s6173_s0 + $0x370] sm:$0xff] }
  0xbd   :  { %3420 = vmatprep.mubr.msk.bf16.mxu0 %vm533_vm0, %v321_v22  ;;  %v143_v22 = vld [vmem:[%s6173_s0 + $0x388] sm:$0xff] }
  0xbe   :  { %v343_v29 = vpack.c.bf16 %v145_v23, %v143_v22  ;;  %v351_v22 = vpack.c.bf16 %v161_v15, %v159_v14 }
  0xc4   :  { %895 = vmatmul.mubr.bf16.gmra.mrb[68].mxu0 %v320_v27  ;;  %v340_v27 = vpack.c.bf16 %v140_v21, %v138_v20 }
  0xc5   :  { %3421 = vmatprep.mubr.msk.bf16.mxu0 %vm533_vm0, %v323_v28 }
  0xcc   :  { %903 = vmatmul.mubr.bf16.gmra.mrb[72].mxu0 %v322_v33 }
  0xcd   :  { %3422 = vmatprep.mubr.msk.bf16.mxu0 %vm533_vm0, %v325_v34  ;;  %v142_v34 = vld [vmem:[%s6173_s0 + $0x380] sm:$0xff] }
  0xce   :  { %v342_v41 = vpack.c.bf16 %v144_v35, %v142_v34 }
  0xd4   :  { %911 = vmatmul.mubr.bf16.gmra.mrb[76].mxu0 %v324_v39 }
  0xd5   :  { %3423 = vmatprep.mubr.msk.bf16.mxu0 %vm533_vm0, %v327_v40 }
  0xdc   :  { %919 = vmatmul.mubr.bf16.gmra.mrb[80].mxu0 %v326_v45 }
  0xdd   :  { %3424 = vmatprep.mubr.msk.bf16.mxu0 %vm533_vm0, %v329_v46 }
  0xe4   :  { %927 = vmatmul.mubr.bf16.gmra.mrb[84].mxu0 %v328_v51  ;;  %v153_v51 = vld [vmem:[%s6173_s0 + $0x3d8] sm:$0xff] }
  0xe5   :  { %3425 = vmatprep.mubr.msk.bf16.mxu0 %vm533_vm0, %v331_v52 }
  0xec   :  { %935 = vmatmul.mubr.bf16.gmra.mrb[88].mxu0 %v330_v57  ;;  %v347_v57 = vpack.c.bf16 %v153_v51, %v151_v50 }
  0xed   :  { %3426 = vmatprep.mubr.msk.bf16.mxu0 %vm533_vm0, %v333_v58 }
  0xf4   :  { %943 = vmatmul.mubr.bf16.gmra.mrb[92].mxu0 %v332_v63  ;;  %v152_v63 = vld [vmem:[%s6173_s0 + $0x3d0] sm:$0xff] }
  0xf5   :  { %3427 = vmatprep.mubr.msk.bf16.mxu0 %vm533_vm0, %v335_v0  ;;  %v155_v0 = vld [vmem:[%s6173_s0 + $0x3e8] sm:$0xff] }
  0xf6   :  { %v349_v7 = vpack.c.bf16 %v157_v1, %v155_v0 }
  0xfc   :  { %951 = vmatmul.mubr.bf16.gmra.mrb[96].mxu0 %v334_v5  ;;  %v346_v5 = vpack.c.bf16 %v152_v63, %v150_v62 }
  0xfd   :  { %3428 = vmatprep.mubr.msk.bf16.mxu0 %vm533_vm0, %v337_v6 }
 0x104   :  { %959 = vmatmul.mubr.bf16.gmra.mrb[100].mxu0 %v336_v11 }
 0x105   :  { %3429 = vmatprep.mubr.msk.bf16.mxu0 %vm533_vm0, %v339_v12  ;;  %v154_v12 = vld [vmem:[%s6173_s0 + $0x3e0] sm:$0xff] }
 0x106   :  { %v348_v20 = vpack.c.bf16 %v156_v13, %v154_v12 }
 0x10c   :  { %967 = vmatmul.mubr.bf16.gmra.mrb[104].mxu0 %v338_v17 }
 0x10d   :  { %3430 = vmatprep.mubr.msk.bf16.mxu0 %vm533_vm0, %v341_v18 }
 0x10f   :  { %v760_v24 = vpop.f32.mrb[0].mxu0 }
 0x110   :  { %v761_v25 = vadd.f32 %v5029_v19, %v760_v24  ;;  %v762_v26 = vpop.f32.mrb[1].mxu0 }
 0x111   :  { %v763_v28 = vpop.f32.mrb[2].mxu0 }
 0x112   :  { %v1271_v30 = vmax.f32 %v761_v25, 0.0  ;;  %v764_v31 = vadd.f32 %v5029_v19, %v763_v28  ;;  %v765_v32 = vpop.f32.mrb[3].mxu0  ;;  %v160_v28 = vld [vmem:[%s6173_s0 + $0x410] sm:$0xff] }
 0x114   :  { %v1272_v33 = vmax.f32 %v764_v31, 0.0  ;;  %975 = vmatmul.mubr.bf16.gmra.mrb[108].mxu0 %v340_v27  ;;  %4016 = vmatprep.mubr.msk.f32.mxu1 %vm1414_vm1, %v1271_v30  ;;  %v158_v27 = vld [vmem:[%s6173_s0 + $0x400] sm:$0xff]  ;;  %v165_v30 = vld [vmem:[%s6173_s0 + $0x438] sm:$0xff] }
 0x115   :  { %3431 = vmatprep.mubr.msk.bf16.mxu0 %vm533_vm0, %v343_v29  ;;  %v163_v29 = vld [vmem:[%s6173_s0 + $0x428] sm:$0xff]  ;;  %v350_v34 = vpack.c.bf16 %v160_v28, %v158_v27 }
 0x116   :  { %4017 = vmatmul.mubr.msk.f32.vlgmr.msra.gmra.mrb[12].mxu1 %vm1414_vm1, %v1272_v33  ;;  %v353_v36 = vpack.c.bf16 %v165_v30, %v163_v29 }
 0x117   :  { %v768_v38 = vpop.f32.mrb[4].mxu0 }
 0x118   :  { %v769_v39 = vadd.f32 %v5029_v19, %v768_v38  ;;  %v770_v40 = vpop.f32.mrb[5].mxu0 }
 0x119   :  { %v771_v42 = vpop.f32.mrb[6].mxu0 }
 0x11a   :  { %v1273_v44 = vmax.f32 %v769_v39, 0.0  ;;  %v772_v45 = vadd.f32 %v5029_v19, %v771_v42  ;;  %v773_v46 = vpop.f32.mrb[7].mxu0  ;;  %v164_v42 = vld [vmem:[%s6173_s0 + $0x430] sm:$0xff] }
 0x11c   :  { %v1274_v47 = vmax.f32 %v772_v45, 0.0  ;;  %983 = vmatmul.mubr.bf16.gmra.mrb[112].mxu0 %v342_v41  ;;  %4019 = vmatprep.mubr.msk.f32.mxu1 %vm1414_vm1, %v1273_v44  ;;  %v162_v41 = vld [vmem:[%s6173_s0 + $0x420] sm:$0xff]  ;;  %v169_v44 = vld [vmem:[%s6173_s0 + $0x458] sm:$0xff] }
 0x11d   :  { %3432 = vmatprep.mubr.msk.bf16.mxu0 %vm533_vm0, %v345_v43  ;;  %v167_v43 = vld [vmem:[%s6173_s0 + $0x448] sm:$0xff]  ;;  %v352_v48 = vpack.c.bf16 %v164_v42, %v162_v41 }
 0x11e   :  { %4020 = vmatmul.mubr.msk.f32.gmra.mrb[14].mxu1 %vm1414_vm1, %v1274_v47  ;;  %v355_v50 = vpack.c.bf16 %v169_v44, %v167_v43 }
 0x11f   :  { %v776_v52 = vpop.f32.mrb[8].mxu0 }
 0x120   :  { %v777_v53 = vadd.f32 %v5029_v19, %v776_v52  ;;  %v778_v54 = vpop.f32.mrb[9].mxu0 }
 0x121   :  { %v779_v56 = vpop.f32.mrb[10].mxu0 }
 0x122   :  { %v1275_v58 = vmax.f32 %v777_v53, 0.0  ;;  %v780_v59 = vadd.f32 %v5029_v19, %v779_v56  ;;  %v781_v60 = vpop.f32.mrb[11].mxu0  ;;  %v168_v56 = vld [vmem:[%s6173_s0 + $0x450] sm:$0xff] }
 0x124   :  { %v1276_v61 = vmax.f32 %v780_v59, 0.0  ;;  %991 = vmatmul.mubr.bf16.gmra.mrb[116].mxu0 %v344_v55  ;;  %4022 = vmatprep.mubr.msk.f32.mxu1 %vm1414_vm1, %v1275_v58  ;;  %v166_v55 = vld [vmem:[%s6173_s0 + $0x440] sm:$0xff]  ;;  %v173_v58 = vld [vmem:[%s6173_s0 + $0x478] sm:$0xff] }
 0x125   :  { %3433 = vmatprep.mubr.msk.bf16.mxu0 %vm533_vm0, %v347_v57  ;;  %v171_v57 = vld [vmem:[%s6173_s0 + $0x468] sm:$0xff]  ;;  %v354_v62 = vpack.c.bf16 %v168_v56, %v166_v55  ;;  %v182_v56 = vld [vmem:[%s6173_s0 + $0x4c0] sm:$0xff] }
 0x126   :  { %4023 = vmatmul.mubr.msk.f32.gmra.mrb[16].mxu1 %vm1414_vm1, %v1276_v61  ;;  %v357_v0 = vpack.c.bf16 %v173_v58, %v171_v57  ;;  %v184_v57 = vld [vmem:[%s6173_s0 + $0x4d0] sm:$0xff] }
 0x127   :  { %v784_v2 = vpop.f32.mrb[12].mxu0 }
 0x128   :  { %v785_v3 = vadd.f32 %v5029_v19, %v784_v2  ;;  %v786_v4 = vpop.f32.mrb[13].mxu0 }
 0x129   :  { %v787_v6 = vpop.f32.mrb[14].mxu0 }
 0x12a   :  { %v1277_v8 = vmax.f32 %v785_v3, 0.0  ;;  %v788_v9 = vadd.f32 %v5029_v19, %v787_v6  ;;  %v789_v10 = vpop.f32.mrb[15].mxu0  ;;  %v172_v6 = vld [vmem:[%s6173_s0 + $0x470] sm:$0xff] }
 0x12c   :  { %v1278_v11 = vmax.f32 %v788_v9, 0.0  ;;  %999 = vmatmul.mubr.bf16.gmra.mrb[120].mxu0 %v346_v5  ;;  %4025 = vmatprep.mubr.msk.f32.mxu1 %vm1414_vm1, %v1277_v8  ;;  %v170_v5 = vld [vmem:[%s6173_s0 + $0x460] sm:$0xff]  ;;  %v177_v8 = vld [vmem:[%s6173_s0 + $0x498] sm:$0xff] }
 0x12d   :  { %3434 = vmatprep.mubr.msk.bf16.mxu0 %vm533_vm0, %v349_v7  ;;  %v175_v7 = vld [vmem:[%s6173_s0 + $0x488] sm:$0xff]  ;;  %v356_v12 = vpack.c.bf16 %v172_v6, %v170_v5 }
 0x12e   :  { %4026 = vmatmul.mubr.msk.f32.gmra.mrb[18].mxu1 %vm1414_vm1, %v1278_v11  ;;  %v359_v14 = vpack.c.bf16 %v177_v8, %v175_v7 }
 0x12f   :  { %v792_v16 = vpop.f32.mrb[16].mxu0 }
 0x130   :  { %v793_v17 = vadd.f32 %v5029_v19, %v792_v16  ;;  %v794_v18 = vpop.f32.mrb[17].mxu0 }
 0x131   :  { %v795_v21 = vpop.f32.mrb[18].mxu0 }
 0x132   :  { %v1279_v23 = vmax.f32 %v793_v17, 0.0  ;;  %v796_v24 = vadd.f32 %v5029_v19, %v795_v21  ;;  %v797_v25 = vpop.f32.mrb[19].mxu0  ;;  %v176_v21 = vld [vmem:[%s6173_s0 + $0x490] sm:$0xff] }
 0x134   :  { %v1280_v26 = vmax.f32 %v796_v24, 0.0  ;;  %1007 = vmatmul.mubr.bf16.gmra.mrb[124].mxu0 %v348_v20  ;;  %4028 = vmatprep.mubr.msk.f32.mxu1 %vm1414_vm1, %v1279_v23  ;;  %v174_v20 = vld [vmem:[%s6173_s0 + $0x480] sm:$0xff]  ;;  %v181_v23 = vld [vmem:[%s6173_s0 + $0x4b8] sm:$0xff] }
 0x135   :  { %3435 = vmatprep.mubr.msk.bf16.mxu0 %vm533_vm0, %v351_v22  ;;  %v179_v22 = vld [vmem:[%s6173_s0 + $0x4a8] sm:$0xff]  ;;  %v358_v27 = vpack.c.bf16 %v176_v21, %v174_v20 }
 0x136   :  { %4029 = vmatmul.mubr.msk.f32.gmra.mrb[20].mxu1 %vm1414_vm1, %v1280_v26  ;;  %v361_v29 = vpack.c.bf16 %v181_v23, %v179_v22 }
 0x137   :  { %v800_v31 = vpop.f32.mrb[20].mxu0 }
 0x138   :  { %v801_v32 = vadd.f32 %v5029_v19, %v800_v31  ;;  %v802_v33 = vpop.f32.mrb[21].mxu0 }
 0x139   :  { %v803_v35 = vpop.f32.mrb[22].mxu0 }
 0x13a   :  { %v1281_v37 = vmax.f32 %v801_v32, 0.0  ;;  %v804_v38 = vadd.f32 %v5029_v19, %v803_v35  ;;  %v805_v39 = vpop.f32.mrb[23].mxu0  ;;  %v178_v35 = vld [vmem:[%s6173_s0 + $0x4a0] sm:$0xff] }
 0x13b   :  { %v185_v39 = vld [vmem:[%s6173_s0 + $0x4d8] sm:$0xff] }
 0x13c   :  { %v1282_v40 = vmax.f32 %v804_v38, 0.0  ;;  %1015 = vmatmul.mubr.bf16.gmra.mrb[128].mxu0 %v350_v34  ;;  %4031 = vmatprep.mubr.msk.f32.mxu1 %vm1414_vm1, %v1281_v37  ;;  %v5200_v34 = vpop.f32.mrb[0].mxu1  ;;  %v183_v38 = vld [vmem:[%s6173_s0 + $0x4c8] sm:$0xff] }
 0x13d   :  { %3436 = vmatprep.mubr.msk.bf16.mxu0 %vm533_vm0, %v353_v36  ;;  %v180_v36 = vld [vmem:[%s6173_s0 + $0x4b0] sm:$0xff]  ;;  %v1250_v37 = vpop.f32.mrb[1].mxu1 }
 0x13e   :  { %4032 = vmatmul.mubr.msk.f32.gmra.mrb[22].mxu1 %vm1414_vm1, %v1282_v40  ;;  %v5216_v41 = vpop.f32.mrb[2].mxu1  ;;  %v360_v44 = vpack.c.bf16 %v180_v36, %v178_v35 }
 0x13f   :  { %v808_v45 = vpop.f32.mrb[24].mxu0 }
 0x140   :  { %v809_v46 = vadd.f32 %v5029_v19, %v808_v45  ;;  %v810_v47 = vpop.f32.mrb[25].mxu0  ;;  %v1253_v45 = vpop.f32.mrb[3].mxu1 }
 0x141   :  { %v811_v49 = vpop.f32.mrb[26].mxu0  ;;  %v363_v47 = vpack.c.bf16 %v185_v39, %v183_v38 }
 0x142   :  { %v1283_v51 = vmax.f32 %v809_v46, 0.0  ;;  %v812_v52 = vadd.f32 %v5029_v19, %v811_v49  ;;  %v813_v53 = vpop.f32.mrb[27].mxu0 }
 0x144   :  { %v1284_v54 = vmax.f32 %v812_v52, 0.0  ;;  %1023 = vmatmul.mubr.bf16.gmra.mrb[132].mxu0 %v352_v48  ;;  %4034 = vmatprep.mubr.msk.f32.mxu1 %vm1414_vm1, %v1283_v51  ;;  %v5219_v48 = vpop.f32.mrb[4].mxu1 }
 0x145   :  { %3437 = vmatprep.mubr.msk.bf16.mxu0 %vm533_vm0, %v355_v50  ;;  %v1258_v52 = vpop.f32.mrb[5].mxu1 }
 0x146   :  { %4035 = vmatmul.mubr.msk.f32.gmra.mrb[24].mxu1 %vm1414_vm1, %v1284_v54  ;;  %v5222_v53 = vpop.f32.mrb[6].mxu1 }
 0x147   :  { %v816_v59 = vpop.f32.mrb[28].mxu0  ;;  %v1261_v55 = vpop.f32.mrb[7].mxu1 }
 0x148   :  { %v817_v60 = vadd.f32 %v5029_v19, %v816_v59  ;;  %v818_v61 = vpop.f32.mrb[29].mxu0  ;;  %v5232_v58 = vpop.f32.mrb[8].mxu1  ;;  %v187_v59 = vld [vmem:[%s6173_s0 + $0x4e8] sm:$0xff] }
 0x149   :  { %v819_v63 = vpop.f32.mrb[30].mxu0  ;;  %v1266_v61 = vpop.f32.mrb[9].mxu1 }
 0x14a   :  { %v1285_v1 = vmax.f32 %v817_v60, 0.0  ;;  %v820_v2 = vadd.f32 %v5029_v19, %v819_v63  ;;  %v821_v3 = vpop.f32.mrb[31].mxu0  ;;  %v189_v60 = vld [vmem:[%s6173_s0 + $0x4f8] sm:$0xff]  ;;  %v5241_v63 = vpop.f32.mrb[10].mxu1 }
 0x14b   :  { %v1269_v3 = vpop.f32.mrb[11].mxu1  ;;  %v365_v5 = vpack.c.bf16 %v189_v60, %v187_v59  ;;  %v200_v59 = vld [vmem:[%s6173_s0 + $0x550] sm:$0xff]  ;;  %v203_v60 = vld [vmem:[%s6173_s0 + $0x568] sm:$0xff]  ;;  %v205_v61 = vld [vmem:[%s6173_s0 + $0x578] sm:$0xff] }
 0x14c   :  { %v1286_v4 = vmax.f32 %v820_v2, 0.0  ;;  %1031 = vmatmul.mubr.bf16.gmra.mrb[136].mxu0 %v354_v62  ;;  %4037 = vmatprep.mubr.msk.f32.mxu1 %vm1414_vm1, %v1285_v1  ;;  %v362_v2 = vpack.c.bf16 %v184_v57, %v182_v56  ;;  %v198_v57 = vld [vmem:[%s6173_s0 + $0x540] sm:$0xff] }
 0x14d   :  { %3438 = vmatprep.mubr.msk.bf16.mxu0 %vm533_vm0, %v357_v0 }
 0x14e   :  { %4038 = vmatmul.mubr.msk.f32.gmra.mrb[26].mxu1 %vm1414_vm1, %v1286_v4 }
 0x14f   :  { %v824_v9 = vpop.f32.mrb[32].mxu0 }
 0x150   :  { %v825_v10 = vadd.f32 %v5029_v19, %v824_v9  ;;  %v826_v11 = vpop.f32.mrb[33].mxu0 }
 0x151   :  { %v827_v13 = vpop.f32.mrb[34].mxu0  ;;  %v188_v11 = vld [vmem:[%s6173_s0 + $0x4f0] sm:$0xff] }
 0x152   :  { %v1287_v15 = vmax.f32 %v825_v10, 0.0  ;;  %v828_v16 = vadd.f32 %v5029_v19, %v827_v13  ;;  %v829_v17 = vpop.f32.mrb[35].mxu0  ;;  %v186_v10 = vld [vmem:[%s6173_s0 + $0x4e0] sm:$0xff]  ;;  %v193_v13 = vld [vmem:[%s6173_s0 + $0x518] sm:$0xff] }
 0x153   :  { %v364_v17 = vpack.c.bf16 %v188_v11, %v186_v10  ;;  %v204_v10 = vld [vmem:[%s6173_s0 + $0x570] sm:$0xff]  ;;  %v207_v11 = vld [vmem:[%s6173_s0 + $0x588] sm:$0xff] }
 0x154   :  { %v1288_v18 = vmax.f32 %v828_v16, 0.0  ;;  %1039 = vmatmul.mubr.bf16.gmra.mrb[140].mxu0 %v356_v12  ;;  %4040 = vmatprep.mubr.msk.f32.mxu1 %vm1414_vm1, %v1287_v15  ;;  %v191_v12 = vld [vmem:[%s6173_s0 + $0x508] sm:$0xff] }
 0x155   :  { %3439 = vmatprep.mubr.msk.bf16.mxu0 %vm533_vm0, %v359_v14  ;;  %v367_v20 = vpack.c.bf16 %v193_v13, %v191_v12  ;;  %v209_v12 = vld [vmem:[%s6173_s0 + $0x598] sm:$0xff] }
 0x156   :  { %4041 = vmatmul.mubr.msk.f32.gmra.mrb[28].mxu1 %vm1414_vm1, %v1288_v18 }
 0x157   :  { %v832_v24 = vpop.f32.mrb[36].mxu0 }
 0x158   :  { %v833_v25 = vadd.f32 %v5029_v19, %v832_v24  ;;  %v834_v26 = vpop.f32.mrb[37].mxu0 }
 0x159   :  { %v835_v28 = vpop.f32.mrb[38].mxu0  ;;  %v192_v26 = vld [vmem:[%s6173_s0 + $0x510] sm:$0xff] }
 0x15a   :  { %v1289_v30 = vmax.f32 %v833_v25, 0.0  ;;  %v836_v31 = vadd.f32 %v5029_v19, %v835_v28  ;;  %v837_v32 = vpop.f32.mrb[39].mxu0  ;;  %v190_v25 = vld [vmem:[%s6173_s0 + $0x500] sm:$0xff]  ;;  %v197_v28 = vld [vmem:[%s6173_s0 + $0x538] sm:$0xff] }
 0x15b   :  { %v366_v32 = vpack.c.bf16 %v192_v26, %v190_v25  ;;  %v208_v25 = vld [vmem:[%s6173_s0 + $0x590] sm:$0xff]  ;;  %v211_v26 = vld [vmem:[%s6173_s0 + $0x5a8] sm:$0xff] }
 0x15c   :  { %v1290_v33 = vmax.f32 %v836_v31, 0.0  ;;  %1047 = vmatmul.mubr.bf16.gmra.mrb[144].mxu0 %v358_v27  ;;  %4043 = vmatprep.mubr.msk.f32.mxu1 %vm1414_vm1, %v1289_v30  ;;  %v195_v27 = vld [vmem:[%s6173_s0 + $0x528] sm:$0xff] }
 0x15d   :  { %3440 = vmatprep.mubr.msk.bf16.mxu0 %vm533_vm0, %v361_v29  ;;  %v369_v35 = vpack.c.bf16 %v197_v28, %v195_v27  ;;  %v213_v27 = vld [vmem:[%s6173_s0 + $0x5b8] sm:$0xff] }
 0x15e   :  { %4044 = vmatmul.mubr.msk.f32.gmra.mrb[30].mxu1 %vm1414_vm1, %v1290_v33 }
 0x15f   :  { %v840_v40 = vpop.f32.mrb[40].mxu0 }
 0x160   :  { %v841_v42 = vadd.f32 %v5029_v19, %v840_v40  ;;  %v842_v43 = vpop.f32.mrb[41].mxu0  ;;  %v194_v40 = vld [vmem:[%s6173_s0 + $0x520] sm:$0xff] }
 0x161   :  { %v843_v46 = vpop.f32.mrb[42].mxu0  ;;  %v199_v43 = vld [vmem:[%s6173_s0 + $0x548] sm:$0xff] }
 0x162   :  { %v1291_v49 = vmax.f32 %v841_v42, 0.0  ;;  %v844_v50 = vadd.f32 %v5029_v19, %v843_v46  ;;  %v845_v51 = vpop.f32.mrb[43].mxu0  ;;  %v196_v42 = vld [vmem:[%s6173_s0 + $0x530] sm:$0xff] }
 0x164   :  { %v1292_v54 = vmax.f32 %v844_v50, 0.0  ;;  %1055 = vmatmul.mubr.bf16.gmra.mrb[148].mxu0 %v360_v44  ;;  %4046 = vmatprep.mubr.msk.f32.mxu1 %vm1414_vm1, %v1291_v49  ;;  %v201_v44 = vld [vmem:[%s6173_s0 + $0x558] sm:$0xff]  ;;  %v368_v49 = vpack.c.bf16 %v196_v42, %v194_v40  ;;  %v212_v40 = vld [vmem:[%s6173_s0 + $0x5b0] sm:$0xff]  ;;  %v215_v42 = vld [vmem:[%s6173_s0 + $0x5c8] sm:$0xff] }
 0x165   :  { %3441 = vmatprep.mubr.msk.bf16.mxu0 %vm533_vm0, %v363_v47  ;;  %v371_v51 = vpack.c.bf16 %v201_v44, %v199_v43  ;;  %v217_v43 = vld [vmem:[%s6173_s0 + $0x5d8] sm:$0xff] }
 0x166   :  { %4047 = vmatmul.mubr.msk.f32.gmra.mrb[32].mxu1 %vm1414_vm1, %v1292_v54 }
 0x167   :  { %v848_v62 = vpop.f32.mrb[44].mxu0 }
 0x168   :  { %v849_v0 = vadd.f32 %v5029_v19, %v848_v62  ;;  %v850_v1 = vpop.f32.mrb[45].mxu0 }
 0x169   :  { %v851_v4 = vpop.f32.mrb[46].mxu0 }
 0x16a   :  { %v1293_v6 = vmax.f32 %v849_v0, 0.0  ;;  %v852_v7 = vadd.f32 %v5029_v19, %v851_v4  ;;  %v853_v8 = vpop.f32.mrb[47].mxu0  ;;  %v373_v4 = vpack.c.bf16 %v205_v61, %v203_v60  ;;  %v221_v60 = vld [vmem:[%s6173_s0 + $0x5f8] sm:$0xff] }
 0x16c   :  { %v1294_v9 = vmax.f32 %v852_v7, 0.0  ;;  %1063 = vmatmul.mubr.bf16.gmra.mrb[152].mxu0 %v362_v2  ;;  %4049 = vmatprep.mubr.msk.f32.mxu1 %vm1414_vm1, %v1293_v6  ;;  %v370_v2 = vpack.c.bf16 %v200_v59, %v198_v57  ;;  %v216_v57 = vld [vmem:[%s6173_s0 + $0x5d0] sm:$0xff]  ;;  %v219_v59 = vld [vmem:[%s6173_s0 + $0x5e8] sm:$0xff] }
 0x16d   :  { %3442 = vmatprep.mubr.msk.bf16.mxu0 %vm533_vm0, %v365_v5 }
 0x16e   :  { %4050 = vmatmul.mubr.msk.f32.gmra.mrb[34].mxu1 %vm1414_vm1, %v1294_v9  ;;  %v202_v9 = vld [vmem:[%s6173_s0 + $0x560] sm:$0xff] }
 0x16f   :  { %v856_v14 = vpop.f32.mrb[48].mxu0 }
 0x170   :  { %v857_v15 = vadd.f32 %v5029_v19, %v856_v14  ;;  %v858_v16 = vpop.f32.mrb[49].mxu0 }
 0x171   :  { %v859_v18 = vpop.f32.mrb[50].mxu0  ;;  %v372_v16 = vpack.c.bf16 %v204_v10, %v202_v9  ;;  %v220_v9 = vld [vmem:[%s6173_s0 + $0x5f0] sm:$0xff]  ;;  %v223_v10 = vld [vmem:[%s6173_s0 + $0x608] sm:$0xff] }
 0x172   :  { %v1295_v21 = vmax.f32 %v857_v15, 0.0  ;;  %v860_v22 = vadd.f32 %v5029_v19, %v859_v18  ;;  %v861_v23 = vpop.f32.mrb[51].mxu0  ;;  %v375_v18 = vpack.c.bf16 %v209_v12, %v207_v11  ;;  %v225_v11 = vld [vmem:[%s6173_s0 + $0x618] sm:$0xff] }
 0x174   :  { %v1296_v24 = vmax.f32 %v860_v22, 0.0  ;;  %1071 = vmatmul.mubr.bf16.gmra.mrb[156].mxu0 %v364_v17  ;;  %4052 = vmatprep.mubr.msk.f32.mxu1 %vm1414_vm1, %v1295_v21 }
 0x175   :  { %3443 = vmatprep.mubr.msk.bf16.mxu0 %vm533_vm0, %v367_v20 }
 0x176   :  { %4053 = vmatmul.mubr.msk.f32.gmra.mrb[36].mxu1 %vm1414_vm1, %v1296_v24  ;;  %v206_v24 = vld [vmem:[%s6173_s0 + $0x580] sm:$0xff] }
 0x177   :  { %v864_v29 = vpop.f32.mrb[52].mxu0 }
 0x178   :  { %v865_v30 = vadd.f32 %v5029_v19, %v864_v29  ;;  %v866_v31 = vpop.f32.mrb[53].mxu0 }
 0x179   :  { %v867_v33 = vpop.f32.mrb[54].mxu0  ;;  %v374_v31 = vpack.c.bf16 %v208_v25, %v206_v24  ;;  %v224_v24 = vld [vmem:[%s6173_s0 + $0x610] sm:$0xff]  ;;  %v227_v25 = vld [vmem:[%s6173_s0 + $0x628] sm:$0xff] }
 0x17a   :  { %v1297_v36 = vmax.f32 %v865_v30, 0.0  ;;  %v868_v37 = vadd.f32 %v5029_v19, %v867_v33  ;;  %v869_v38 = vpop.f32.mrb[55].mxu0  ;;  %v377_v33 = vpack.c.bf16 %v213_v27, %v211_v26  ;;  %v229_v26 = vld [vmem:[%s6173_s0 + $0x638] sm:$0xff] }
 0x17c   :  { %v1298_v39 = vmax.f32 %v868_v37, 0.0  ;;  %1079 = vmatmul.mubr.bf16.gmra.mrb[160].mxu0 %v366_v32  ;;  %4055 = vmatprep.mubr.msk.f32.mxu1 %vm1414_vm1, %v1297_v36 }
 0x17d   :  { %3444 = vmatprep.mubr.msk.bf16.mxu0 %vm533_vm0, %v369_v35 }
 0x17e   :  { %4056 = vmatmul.mubr.msk.f32.gmra.mrb[38].mxu1 %vm1414_vm1, %v1298_v39  ;;  %v210_v39 = vld [vmem:[%s6173_s0 + $0x5a0] sm:$0xff] }
 0x17f   :  { %v872_v45 = vpop.f32.mrb[56].mxu0 }
 0x180   :  { %v873_v46 = vadd.f32 %v5029_v19, %v872_v45  ;;  %v874_v47 = vpop.f32.mrb[57].mxu0 }
 0x181   :  { %v875_v50 = vpop.f32.mrb[58].mxu0  ;;  %v376_v47 = vpack.c.bf16 %v212_v40, %v210_v39  ;;  %v228_v39 = vld [vmem:[%s6173_s0 + $0x630] sm:$0xff]  ;;  %v231_v40 = vld [vmem:[%s6173_s0 + $0x648] sm:$0xff] }
 0x182   :  { %v1299_v52 = vmax.f32 %v873_v46, 0.0  ;;  %v876_v54 = vadd.f32 %v5029_v19, %v875_v50  ;;  %v877_v55 = vpop.f32.mrb[59].mxu0  ;;  %v379_v50 = vpack.c.bf16 %v217_v43, %v215_v42  ;;  %v233_v42 = vld [vmem:[%s6173_s0 + $0x658] sm:$0xff] }
 0x184   :  { %v1300_v56 = vmax.f32 %v876_v54, 0.0  ;;  %1087 = vmatmul.mubr.bf16.gmra.mrb[164].mxu0 %v368_v49  ;;  %4058 = vmatprep.mubr.msk.f32.mxu1 %vm1414_vm1, %v1299_v52 }
 0x185   :  { %3445 = vmatprep.mubr.msk.bf16.mxu0 %vm533_vm0, %v371_v51 }
 0x186   :  { %4059 = vmatmul.mubr.msk.f32.gmra.mrb[40].mxu1 %vm1414_vm1, %v1300_v56  ;;  %v214_v56 = vld [vmem:[%s6173_s0 + $0x5c0] sm:$0xff] }
 0x187   :  { %v880_v62 = vpop.f32.mrb[60].mxu0 }
 0x188   :  { %v881_v0 = vadd.f32 %v5029_v19, %v880_v62  ;;  %v882_v1 = vpop.f32.mrb[61].mxu0 }
 0x189   :  { %v883_v3 = vpop.f32.mrb[62].mxu0  ;;  %v378_v1 = vpack.c.bf16 %v216_v57, %v214_v56  ;;  %v232_v56 = vld [vmem:[%s6173_s0 + $0x650] sm:$0xff]  ;;  %v235_v57 = vld [vmem:[%s6173_s0 + $0x668] sm:$0xff] }
 0x18a   :  { %v1301_v5 = vmax.f32 %v881_v0, 0.0  ;;  %v884_v6 = vadd.f32 %v5029_v19, %v883_v3  ;;  %v885_v7 = vpop.f32.mrb[63].mxu0  ;;  %v381_v3 = vpack.c.bf16 %v221_v60, %v219_v59  ;;  %v237_v59 = vld [vmem:[%s6173_s0 + $0x678] sm:$0xff] }
 0x18c   :  { %v1302_v8 = vmax.f32 %v884_v6, 0.0  ;;  %1095 = vmatmul.mubr.bf16.gmra.mrb[168].mxu0 %v370_v2  ;;  %4061 = vmatprep.mubr.msk.f32.mxu1 %vm1414_vm1, %v1301_v5 }
 0x18d   :  { %3446 = vmatprep.mubr.msk.bf16.mxu0 %vm533_vm0, %v373_v4 }
 0x18e   :  { %4062 = vmatmul.mubr.msk.f32.gmra.mrb[42].mxu1 %vm1414_vm1, %v1302_v8  ;;  %v218_v8 = vld [vmem:[%s6173_s0 + $0x5e0] sm:$0xff] }
 0x18f   :  { %v888_v13 = vpop.f32.mrb[64].mxu0 }
 0x190   :  { %v889_v14 = vadd.f32 %v5029_v19, %v888_v13  ;;  %v890_v15 = vpop.f32.mrb[65].mxu0 }
 0x191   :  { %v891_v17 = vpop.f32.mrb[66].mxu0  ;;  %v380_v15 = vpack.c.bf16 %v220_v9, %v218_v8  ;;  %v236_v8 = vld [vmem:[%s6173_s0 + $0x670] sm:$0xff]  ;;  %v239_v9 = vld [vmem:[%s6173_s0 + $0x688] sm:$0xff] }
 0x192   :  { %v1303_v20 = vmax.f32 %v889_v14, 0.0  ;;  %v892_v21 = vadd.f32 %v5029_v19, %v891_v17  ;;  %v893_v22 = vpop.f32.mrb[67].mxu0  ;;  %v383_v17 = vpack.c.bf16 %v225_v11, %v223_v10  ;;  %v241_v10 = vld [vmem:[%s6173_s0 + $0x698] sm:$0xff] }
 0x194   :  { %v1304_v23 = vmax.f32 %v892_v21, 0.0  ;;  %1103 = vmatmul.mubr.bf16.gmra.mrb[172].mxu0 %v372_v16  ;;  %4064 = vmatprep.mubr.msk.f32.mxu1 %vm1414_vm1, %v1303_v20 }
 0x195   :  { %3447 = vmatprep.mubr.msk.bf16.mxu0 %vm533_vm0, %v375_v18 }
 0x196   :  { %4065 = vmatmul.mubr.msk.f32.gmra.mrb[44].mxu1 %vm1414_vm1, %v1304_v23  ;;  %v222_v23 = vld [vmem:[%s6173_s0 + $0x600] sm:$0xff] }
 0x197   :  { %v896_v28 = vpop.f32.mrb[68].mxu0 }
 0x198   :  { %v897_v29 = vadd.f32 %v5029_v19, %v896_v28  ;;  %v898_v30 = vpop.f32.mrb[69].mxu0 }
 0x199   :  { %v899_v32 = vpop.f32.mrb[70].mxu0  ;;  %v382_v30 = vpack.c.bf16 %v224_v24, %v222_v23  ;;  %v240_v23 = vld [vmem:[%s6173_s0 + $0x690] sm:$0xff]  ;;  %v243_v24 = vld [vmem:[%s6173_s0 + $0x6a8] sm:$0xff] }
 0x19a   :  { %v1305_v35 = vmax.f32 %v897_v29, 0.0  ;;  %v900_v36 = vadd.f32 %v5029_v19, %v899_v32  ;;  %v901_v37 = vpop.f32.mrb[71].mxu0  ;;  %v385_v32 = vpack.c.bf16 %v229_v26, %v227_v25  ;;  %v245_v25 = vld [vmem:[%s6173_s0 + $0x6b8] sm:$0xff] }
 0x19c   :  { %v1306_v38 = vmax.f32 %v900_v36, 0.0  ;;  %1111 = vmatmul.mubr.bf16.gmra.mrb[176].mxu0 %v374_v31  ;;  %4067 = vmatprep.mubr.msk.f32.mxu1 %vm1414_vm1, %v1305_v35 }
 0x19d   :  { %3448 = vmatprep.mubr.msk.bf16.mxu0 %vm533_vm0, %v377_v33 }
 0x19e   :  { %4068 = vmatmul.mubr.msk.f32.gmra.mrb[46].mxu1 %vm1414_vm1, %v1306_v38  ;;  %v226_v38 = vld [vmem:[%s6173_s0 + $0x620] sm:$0xff] }
 0x19f   :  { %v904_v44 = vpop.f32.mrb[72].mxu0 }
 0x1a0   :  { %v905_v45 = vadd.f32 %v5029_v19, %v904_v44  ;;  %v906_v46 = vpop.f32.mrb[73].mxu0 }
 0x1a1   :  { %v907_v49 = vpop.f32.mrb[74].mxu0  ;;  %v384_v46 = vpack.c.bf16 %v228_v39, %v226_v38  ;;  %v244_v38 = vld [vmem:[%s6173_s0 + $0x6b0] sm:$0xff]  ;;  %v247_v39 = vld [vmem:[%s6173_s0 + $0x6c8] sm:$0xff] }
 0x1a2   :  { %v1307_v51 = vmax.f32 %v905_v45, 0.0  ;;  %v908_v52 = vadd.f32 %v5029_v19, %v907_v49  ;;  %v909_v54 = vpop.f32.mrb[75].mxu0  ;;  %v387_v49 = vpack.c.bf16 %v233_v42, %v231_v40  ;;  %v249_v40 = vld [vmem:[%s6173_s0 + $0x6d8] sm:$0xff] }
 0x1a4   :  { %v1308_v55 = vmax.f32 %v908_v52, 0.0  ;;  %1119 = vmatmul.mubr.bf16.gmra.mrb[180].mxu0 %v376_v47  ;;  %4070 = vmatprep.mubr.msk.f32.mxu1 %vm1414_vm1, %v1307_v51 }
 0x1a5   :  { %3449 = vmatprep.mubr.msk.bf16.mxu0 %vm533_vm0, %v379_v50 }
 0x1a6   :  { %4071 = vmatmul.mubr.msk.f32.gmra.mrb[48].mxu1 %vm1414_vm1, %v1308_v55  ;;  %v230_v55 = vld [vmem:[%s6173_s0 + $0x640] sm:$0xff] }
 0x1a7   :  { %v912_v61 = vpop.f32.mrb[76].mxu0 }
 0x1a8   :  { %v913_v62 = vadd.f32 %v5029_v19, %v912_v61  ;;  %v914_v0 = vpop.f32.mrb[77].mxu0 }
 0x1a9   :  { %v915_v2 = vpop.f32.mrb[78].mxu0  ;;  %v386_v0 = vpack.c.bf16 %v232_v56, %v230_v55  ;;  %v248_v55 = vld [vmem:[%s6173_s0 + $0x6d0] sm:$0xff]  ;;  %v251_v56 = vld [vmem:[%s6173_s0 + $0x6e8] sm:$0xff] }
 0x1aa   :  { %v1309_v4 = vmax.f32 %v913_v62, 0.0  ;;  %v916_v5 = vadd.f32 %v5029_v19, %v915_v2  ;;  %v917_v6 = vpop.f32.mrb[79].mxu0  ;;  %v389_v2 = vpack.c.bf16 %v237_v59, %v235_v57  ;;  %v253_v57 = vld [vmem:[%s6173_s0 + $0x6f8] sm:$0xff] }
 0x1ac   :  { %v1310_v7 = vmax.f32 %v916_v5, 0.0  ;;  %1127 = vmatmul.mubr.bf16.gmra.mrb[184].mxu0 %v378_v1  ;;  %4073 = vmatprep.mubr.msk.f32.mxu1 %vm1414_vm1, %v1309_v4 }
 0x1ad   :  { %3450 = vmatprep.mubr.msk.bf16.mxu0 %vm533_vm0, %v381_v3 }
 0x1ae   :  { %4074 = vmatmul.mubr.msk.f32.gmra.mrb[50].mxu1 %vm1414_vm1, %v1310_v7  ;;  %v234_v7 = vld [vmem:[%s6173_s0 + $0x660] sm:$0xff] }
 0x1af   :  { %v920_v12 = vpop.f32.mrb[80].mxu0 }
 0x1b0   :  { %v921_v13 = vadd.f32 %v5029_v19, %v920_v12  ;;  %v922_v14 = vpop.f32.mrb[81].mxu0 }
 0x1b1   :  { %v923_v16 = vpop.f32.mrb[82].mxu0  ;;  %v388_v14 = vpack.c.bf16 %v236_v8, %v234_v7 }
 0x1b2   :  { %v1311_v18 = vmax.f32 %v921_v13, 0.0  ;;  %v924_v20 = vadd.f32 %v5029_v19, %v923_v16  ;;  %v925_v21 = vpop.f32.mrb[83].mxu0  ;;  %v391_v16 = vpack.c.bf16 %v241_v10, %v239_v9 }
 0x1b4   :  { %v1312_v22 = vmax.f32 %v924_v20, 0.0  ;;  %1135 = vmatmul.mubr.bf16.gmra.mrb[188].mxu0 %v380_v15  ;;  %4076 = vmatprep.mubr.msk.f32.mxu1 %vm1414_vm1, %v1311_v18 }
 0x1b5   :  { %3451 = vmatprep.mubr.msk.bf16.mxu0 %vm533_vm0, %v383_v17 }
 0x1b6   :  { %4077 = vmatmul.mubr.msk.f32.gmra.mrb[52].mxu1 %vm1414_vm1, %v1312_v22  ;;  %v238_v22 = vld [vmem:[%s6173_s0 + $0x680] sm:$0xff] }
 0x1b7   :  { %v928_v27 = vpop.f32.mrb[84].mxu0 }
 0x1b8   :  { %v929_v28 = vadd.f32 %v5029_v19, %v928_v27  ;;  %v930_v29 = vpop.f32.mrb[85].mxu0 }
 0x1b9   :  { %v931_v31 = vpop.f32.mrb[86].mxu0  ;;  %v390_v29 = vpack.c.bf16 %v240_v23, %v238_v22 }
 0x1ba   :  { %v1313_v33 = vmax.f32 %v929_v28, 0.0  ;;  %v932_v35 = vadd.f32 %v5029_v19, %v931_v31  ;;  %v933_v36 = vpop.f32.mrb[87].mxu0  ;;  %v393_v31 = vpack.c.bf16 %v245_v25, %v243_v24 }
 0x1bc   :  { %v1314_v37 = vmax.f32 %v932_v35, 0.0  ;;  %1143 = vmatmul.mubr.bf16.gmra.mrb[192].mxu0 %v382_v30  ;;  %4079 = vmatprep.mubr.msk.f32.mxu1 %vm1414_vm1, %v1313_v33 }
 0x1bd   :  { %3452 = vmatprep.mubr.msk.bf16.mxu0 %vm533_vm0, %v385_v32 }
 0x1be   :  { %4080 = vmatmul.mubr.msk.f32.gmra.mrb[54].mxu1 %vm1414_vm1, %v1314_v37  ;;  %v242_v37 = vld [vmem:[%s6173_s0 + $0x6a0] sm:$0xff] }
 0x1bf   :  { %v936_v43 = vpop.f32.mrb[88].mxu0 }
 0x1c0   :  { %v937_v44 = vadd.f32 %v5029_v19, %v936_v43  ;;  %v938_v45 = vpop.f32.mrb[89].mxu0 }
 0x1c1   :  { %v939_v47 = vpop.f32.mrb[90].mxu0  ;;  %v392_v45 = vpack.c.bf16 %v244_v38, %v242_v37  ;;  %v256_v37 = vld [vmem:[%s6173_s0 + $0x710] sm:$0xff]  ;;  %v259_v38 = vld [vmem:[%s6173_s0 + $0x728] sm:$0xff] }
 0x1c2   :  { %v1315_v50 = vmax.f32 %v937_v44, 0.0  ;;  %v940_v51 = vadd.f32 %v5029_v19, %v939_v47  ;;  %v941_v52 = vpop.f32.mrb[91].mxu0  ;;  %v395_v47 = vpack.c.bf16 %v249_v40, %v247_v39  ;;  %v261_v39 = vld [vmem:[%s6173_s0 + $0x738] sm:$0xff] }
 0x1c4   :  { %v1316_v54 = vmax.f32 %v940_v51, 0.0  ;;  %1151 = vmatmul.mubr.bf16.gmra.mrb[196].mxu0 %v384_v46  ;;  %4082 = vmatprep.mubr.msk.f32.mxu1 %vm1414_vm1, %v1315_v50 }
 0x1c5   :  { %3453 = vmatprep.mubr.msk.bf16.mxu0 %vm533_vm0, %v387_v49 }
 0x1c6   :  { %4083 = vmatmul.mubr.msk.f32.gmra.mrb[56].mxu1 %vm1414_vm1, %v1316_v54  ;;  %v246_v54 = vld [vmem:[%s6173_s0 + $0x6c0] sm:$0xff] }
 0x1c7   :  { %v944_v60 = vpop.f32.mrb[92].mxu0 }
 0x1c8   :  { %v945_v61 = vadd.f32 %v5029_v19, %v944_v60  ;;  %v946_v62 = vpop.f32.mrb[93].mxu0  ;;  %v5518_v60 = vld [vmem:[%s6177_s4] ss:$0 sm:$0xff] }
 0x1c9   :  { %v947_v1 = vpop.f32.mrb[94].mxu0 }
 0x1ca   :  { %v1317_v3 = vmax.f32 %v945_v61, 0.0  ;;  %v948_v4 = vadd.f32 %v5029_v19, %v947_v1  ;;  %v949_v5 = vpop.f32.mrb[95].mxu0 }
 0x1cb   :  { %v5524_v5 = vld [vmem:[%s6175_s2] ss:$0 sm:$0xff] }
 0x1cc   :  { %v1318_v6 = vmax.f32 %v948_v4, 0.0  ;;  %1159 = vmatmul.mubr.bf16.gmra.mrb[200].mxu0 %v386_v0  ;;  %4085 = vmatprep.mubr.msk.f32.mxu1 %vm1414_vm1, %v1317_v3  ;;  %v394_v0 = vpack.c.bf16 %v248_v55, %v246_v54  ;;  %v397_v3 = vpack.c.bf16 %v253_v57, %v251_v56 }
 0x1cd   :  { %3454 = vmatprep.mubr.msk.bf16.mxu0 %vm533_vm0, %v389_v2 }
 0x1ce   :  { %4086 = vmatmul.mubr.msk.f32.gmra.mrb[58].mxu1 %vm1414_vm1, %v1318_v6 }
 0x1cf   :  { %v952_v11 = vpop.f32.mrb[96].mxu0 }
 0x1d0   :  { %v953_v12 = vadd.f32 %v5029_v19, %v952_v11  ;;  %v954_v13 = vpop.f32.mrb[97].mxu0 }
 0x1d1   :  { %v955_v15 = vpop.f32.mrb[98].mxu0  ;;  %v250_v13 = vld [vmem:[%s6173_s0 + $0x6e0] sm:$0xff] }
 0x1d2   :  { %v1319_v17 = vmax.f32 %v953_v12, 0.0  ;;  %v956_v18 = vadd.f32 %v5029_v19, %v955_v15  ;;  %v957_v20 = vpop.f32.mrb[99].mxu0  ;;  %v255_v15 = vld [vmem:[%s6173_s0 + $0x708] sm:$0xff] }
 0x1d4   :  { %v1320_v21 = vmax.f32 %v956_v18, 0.0  ;;  %1167 = vmatmul.mubr.bf16.gmra.mrb[204].mxu0 %v388_v14  ;;  %4088 = vmatprep.mubr.msk.f32.mxu1 %vm1414_vm1, %v1319_v17  ;;  %v252_v14 = vld [vmem:[%s6173_s0 + $0x6f0] sm:$0xff] }
 0x1d5   :  { %3455 = vmatprep.mubr.msk.bf16.mxu0 %vm533_vm0, %v391_v16  ;;  %v257_v16 = vld [vmem:[%s6173_s0 + $0x718] sm:$0xff]  ;;  %v396_v22 = vpack.c.bf16 %v252_v14, %v250_v13 }
 0x1d6   :  { %4089 = vmatmul.mubr.msk.f32.gmra.mrb[60].mxu1 %vm1414_vm1, %v1320_v21  ;;  %v399_v25 = vpack.c.bf16 %v257_v16, %v255_v15 }
 0x1d7   :  { %v960_v26 = vpop.f32.mrb[100].mxu0 }
 0x1d8   :  { %v961_v27 = vadd.f32 %v5029_v19, %v960_v26  ;;  %v962_v28 = vpop.f32.mrb[101].mxu0 }
 0x1d9   :  { %v963_v30 = vpop.f32.mrb[102].mxu0 }
 0x1da   :  { %v1321_v32 = vmax.f32 %v961_v27, 0.0  ;;  %v964_v33 = vadd.f32 %v5029_v19, %v963_v30  ;;  %v965_v35 = vpop.f32.mrb[103].mxu0 }
 0x1dc   :  { %v1322_v36 = vmax.f32 %v964_v33, 0.0  ;;  %1175 = vmatmul.mubr.bf16.gmra.mrb[208].mxu0 %v390_v29  ;;  %4091 = vmatprep.mubr.msk.f32.mxu1 %vm1414_vm1, %v1321_v32 }
 0x1dd   :  { %3456 = vmatprep.mubr.msk.bf16.mxu0 %vm533_vm0, %v393_v31 }
 0x1de   :  { %4092 = vmatmul.mubr.msk.f32.gmra.mrb[62].mxu1 %vm1414_vm1, %v1322_v36  ;;  %v254_v36 = vld [vmem:[%s6173_s0 + $0x700] sm:$0xff] }
 0x1df   :  { %v968_v42 = vpop.f32.mrb[104].mxu0 }
 0x1e0   :  { %v969_v43 = vadd.f32 %v5029_v19, %v968_v42  ;;  %v970_v44 = vpop.f32.mrb[105].mxu0 }
 0x1e1   :  { %v971_v46 = vpop.f32.mrb[106].mxu0 }
 0x1e2   :  { %v1323_v49 = vmax.f32 %v969_v43, 0.0  ;;  %v972_v50 = vadd.f32 %v5029_v19, %v971_v46  ;;  %v973_v51 = vpop.f32.mrb[107].mxu0 }
 0x1e4   :  { %v1324_v52 = vmax.f32 %v972_v50, 0.0  ;;  %1183 = vmatmul.mubr.bf16.gmra.mrb[212].mxu0 %v392_v45  ;;  %4094 = vmatprep.mubr.msk.f32.mxu1 %vm1414_vm1, %v1323_v49  ;;  %v398_v45 = vpack.c.bf16 %v256_v37, %v254_v36  ;;  %v401_v49 = vpack.c.bf16 %v261_v39, %v259_v38 }
 0x1e5   :  { %3457 = vmatprep.mubr.msk.bf16.mxu0 %vm533_vm0, %v395_v47 }
 0x1e6   :  { %4095 = vmatmul.mubr.msk.f32.gmra.mrb[64].mxu1 %vm1414_vm1, %v1324_v52 }
 0x1e7   :  { %v976_v59 = vpop.f32.mrb[108].mxu0 }
 0x1e8   :  { %v977_v61 = vadd.f32 %v5029_v19, %v976_v59  ;;  %v978_v62 = vpop.f32.mrb[109].mxu0 }
 0x1e9   :  { %v979_v1 = vpop.f32.mrb[110].mxu0  ;;  %v4018_v2 = vpop.f32.mrb[12].mxu1  ;;  %v258_v62 = vld [vmem:[%s6173_s0 + $0x720] sm:$0xff] }
 0x1ea   :  { %v1325_v4 = vmax.f32 %v977_v61, 0.0  ;;  %v980_v6 = vadd.f32 %v5524_v5, %v979_v1  ;;  %v1871_v7 = vadd.f32 %v4018_v2, %v5518_v60  ;;  %v981_v8 = vpop.f32.mrb[111].mxu0  ;;  %v1865_v9 = vpop.f32.mrb[13].mxu1  ;;  %v263_v1 = vld [vmem:[%s6173_s0 + $0x748] sm:$0xff]  ;;  %v265_v2 = vld [vmem:[%s6173_s0 + $0x758] sm:$0xff] }
 0x1eb   :  { %v1866_v10 = vadd.f32 %v5518_v60, %v1865_v9 }
 0x1ec   :  { %v1326_v19 = vmax.f32 %v980_v6, 0.0  ;;  %v2505_v11 = vmax.f32 %v1871_v7, 0.0  ;;  %1191 = vmatmul.mubr.bf16.gmra.mrb[216].mxu0 %v394_v0  ;;  %4097 = vmatprep.mubr.msk.f32.mxu1 %vm1414_vm1, %v1325_v4  ;;  %v260_v0 = vld [vmem:[%s6173_s0 + $0x730] sm:$0xff] }
 0x1ed   :  { %v2504_v12 = vmax.f32 %v1866_v10, 0.0  ;;  %3458 = vmatprep.mubr.msk.bf16.mxu0 %vm533_vm0, %v397_v3  ;;  %v400_v8 = vpack.c.bf16 %v260_v0, %v258_v62 }
 0x1ee   :  { %4098 = vmatmul.mubr.msk.f32.gmra.mrb[66].mxu1 %vm1414_vm1, %v1326_v19  ;;  %v403_v19 = vpack.c.bf16 %v265_v2, %v263_v1 }
 0x1ef   :  { %v5544_v17 = vpack.c.bf16 %v2505_v11, %v2504_v12  ;;  %v984_v18 = vpop.f32.mrb[112].mxu0 }
 0x1f0   :  { %v985_v20 = vadd.f32 %v5524_v5, %v984_v18  ;;  %v986_v21 = vpop.f32.mrb[113].mxu0 }
 0x1f1   :  { %v987_v23 = vpop.f32.mrb[114].mxu0  ;;  %v4021_v24 = vpop.f32.mrb[14].mxu1 }
 0x1f2   :  { %v1327_v26 = vmax.f32 %v985_v20, 0.0  ;;  %v988_v27 = vadd.f32 %v5524_v5, %v987_v23  ;;  %v1881_v28 = vadd.f32 %v4021_v24, %v5518_v60  ;;  %v989_v29 = vpop.f32.mrb[115].mxu0  ;;  %v1875_v30 = vpop.f32.mrb[15].mxu1  ;;  %v264_v23 = vld [vmem:[%s6173_s0 + $0x750] sm:$0xff]  ;;  %v267_v24 = vld [vmem:[%s6173_s0 + $0x768] sm:$0xff] }
 0x1f3   :  { %v1876_v31 = vadd.f32 %v5518_v60, %v1875_v30 }
 0x1f4   :  { %v1328_v32 = vmax.f32 %v988_v27, 0.0  ;;  %v2507_v33 = vmax.f32 %v1881_v28, 0.0  ;;  %1199 = vmatmul.mubr.bf16.gmra.mrb[220].mxu0 %v396_v22  ;;  %4100 = vmatprep.mubr.msk.f32.mxu1 %vm1414_vm1, %v1327_v26  ;;  %v262_v22 = vld [vmem:[%s6173_s0 + $0x740] sm:$0xff] }
 0x1f5   :  { %v2506_v35 = vmax.f32 %v1876_v31, 0.0  ;;  %3459 = vmatprep.mubr.msk.bf16.mxu0 %vm533_vm0, %v399_v25  ;;  %v269_v25 = vld [vmem:[%s6173_s0 + $0x778] sm:$0xff]  ;;  %v402_v30 = vpack.c.bf16 %v264_v23, %v262_v22 }
 0x1f6   :  { %4101 = vmatmul.mubr.msk.f32.gmra.mrb[68].mxu1 %vm1414_vm1, %v1328_v32 }
 0x1f7   :  { %v5565_v40 = vpack.c.bf16 %v2507_v33, %v2506_v35  ;;  %v992_v42 = vpop.f32.mrb[116].mxu0  ;;  %v405_v33 = vpack.c.bf16 %v269_v25, %v267_v24 }
 0x1f8   :  { %v993_v43 = vadd.f32 %v5524_v5, %v992_v42  ;;  %v994_v44 = vpop.f32.mrb[117].mxu0 }
 0x1f9   :  { %v995_v46 = vpop.f32.mrb[118].mxu0  ;;  %v4024_v47 = vpop.f32.mrb[16].mxu1 }
 0x1fa   :  { %v1329_v50 = vmax.f32 %v993_v43, 0.0  ;;  %v996_v51 = vadd.f32 %v5524_v5, %v995_v46  ;;  %v1891_v52 = vadd.f32 %v4024_v47, %v5518_v60  ;;  %v997_v54 = vpop.f32.mrb[119].mxu0  ;;  %v1885_v55 = vpop.f32.mrb[17].mxu1  ;;  %v266_v46 = vld [vmem:[%s6173_s0 + $0x760] sm:$0xff]  ;;  %v268_v47 = vld [vmem:[%s6173_s0 + $0x770] sm:$0xff] }
 0x1fb   :  { %v1886_v56 = vadd.f32 %v5518_v60, %v1885_v55 }
 0x1fc   :  { %v1330_v57 = vmax.f32 %v996_v51, 0.0  ;;  %v2509_v59 = vmax.f32 %v1891_v52, 0.0  ;;  %1207 = vmatmul.mubr.bf16.gmra.mrb[224].mxu0 %v398_v45  ;;  %4103 = vmatprep.mubr.msk.f32.mxu1 %vm1414_vm1, %v1329_v50  ;;  %v273_v50 = vld [vmem:[%s6173_s0 + $0x798] sm:$0xff] }
 0x1fd   :  { %v2508_v61 = vmax.f32 %v1886_v56, 0.0  ;;  %3460 = vmatprep.mubr.msk.bf16.mxu0 %vm533_vm0, %v401_v49  ;;  %v271_v49 = vld [vmem:[%s6173_s0 + $0x788] sm:$0xff]  ;;  %v404_v56 = vpack.c.bf16 %v268_v47, %v266_v46 }
 0x1fe   :  { %4104 = vmatmul.mubr.msk.f32.gmra.mrb[70].mxu1 %vm1414_vm1, %v1330_v57 }
 0x1ff   :  { %v5586_v3 = vpack.c.bf16 %v2509_v59, %v2508_v61  ;;  %v1000_v4 = vpop.f32.mrb[120].mxu0  ;;  %v407_v61 = vpack.c.bf16 %v273_v50, %v271_v49 }
 0x200   :  { %v1001_v6 = vadd.f32 %v5524_v5, %v1000_v4  ;;  %v1002_v7 = vpop.f32.mrb[121].mxu0 }
 0x201   :  { %v1003_v9 = vpop.f32.mrb[122].mxu0  ;;  %v4027_v10 = vpop.f32.mrb[18].mxu1 }
 0x202   :  { %v1331_v11 = vmax.f32 %v1001_v6, 0.0  ;;  %v1004_v12 = vadd.f32 %v5524_v5, %v1003_v9  ;;  %v1901_v13 = vadd.f32 %v4027_v10, %v5518_v60  ;;  %v1005_v14 = vpop.f32.mrb[123].mxu0  ;;  %v1895_v15 = vpop.f32.mrb[19].mxu1  ;;  %v270_v10 = vld [vmem:[%s6173_s0 + $0x780] sm:$0xff] }
 0x203   :  { %v1896_v16 = vadd.f32 %v5518_v60, %v1895_v15 }
 0x204   :  { %v1332_v18 = vmax.f32 %v1004_v12, 0.0  ;;  %v2511_v20 = vmax.f32 %v1901_v13, 0.0  ;;  %1215 = vmatmul.mubr.bf16.gmra.mrb[228].mxu0 %v400_v8  ;;  %4106 = vmatprep.mubr.msk.f32.mxu1 %vm1414_vm1, %v1331_v11 }
 0x205   :  { %v2510_v21 = vmax.f32 %v1896_v16, 0.0  ;;  %3461 = vmatprep.mubr.msk.bf16.mxu0 %vm533_vm0, %v403_v19  ;;  %v272_v19 = vld [vmem:[%s6173_s0 + $0x790] sm:$0xff] }
 0x206   :  { %4107 = vmatmul.mubr.msk.f32.gmra.mrb[72].mxu1 %vm1414_vm1, %v1332_v18  ;;  %v406_v15 = vpack.c.bf16 %v272_v19, %v270_v10 }
 0x207   :  { %v5607_v26 = vpack.c.bf16 %v2511_v20, %v2510_v21  ;;  %v1008_v27 = vpop.f32.mrb[124].mxu0 }
 0x208   :  { %v1009_v28 = vadd.f32 %v5524_v5, %v1008_v27  ;;  %v1010_v29 = vpop.f32.mrb[125].mxu0 }
 0x209   :  { %v1011_v31 = vpop.f32.mrb[126].mxu0  ;;  %v4030_v32 = vpop.f32.mrb[20].mxu1 }
 0x20a   :  { %v1333_v35 = vmax.f32 %v1009_v28, 0.0  ;;  %v1012_v36 = vadd.f32 %v5524_v5, %v1011_v31  ;;  %v1911_v37 = vadd.f32 %v4030_v32, %v5518_v60  ;;  %v1013_v38 = vpop.f32.mrb[127].mxu0  ;;  %v1905_v39 = vpop.f32.mrb[21].mxu1 }
 0x20b   :  { %v1906_v42 = vadd.f32 %v5518_v60, %v1905_v39 }
 0x20c   :  { %v1334_v43 = vmax.f32 %v1012_v36, 0.0  ;;  %v2513_v44 = vmax.f32 %v1911_v37, 0.0  ;;  %1223 = vmatmul.mubr.bf16.gmra.mrb[232].mxu0 %v402_v30  ;;  %4109 = vmatprep.mubr.msk.f32.mxu1 %vm1414_vm1, %v1333_v35 }
 0x20d   :  { %v2512_v45 = vmax.f32 %v1906_v42, 0.0  ;;  %3462 = vmatprep.mubr.msk.bf16.mxu0 %vm533_vm0, %v405_v33 }
 0x20e   :  { %4110 = vmatmul.mubr.msk.f32.gmra.mrb[74].mxu1 %vm1414_vm1, %v1334_v43 }
 0x20f   :  { %v5628_v51 = vpack.c.bf16 %v2513_v44, %v2512_v45  ;;  %v1016_v52 = vpop.f32.mrb[128].mxu0 }
 0x210   :  { %v1017_v54 = vadd.f32 %v5524_v5, %v1016_v52  ;;  %v1018_v55 = vpop.f32.mrb[129].mxu0 }
 0x211   :  { %v1019_v57 = vpop.f32.mrb[130].mxu0  ;;  %v4033_v59 = vpop.f32.mrb[22].mxu1 }
 0x212   :  { %v1335_v62 = vmax.f32 %v1017_v54, 0.0  ;;  %v1020_v0 = vadd.f32 %v5524_v5, %v1019_v57  ;;  %v1921_v1 = vadd.f32 %v4033_v59, %v5518_v60  ;;  %v1021_v2 = vpop.f32.mrb[131].mxu0  ;;  %v1915_v4 = vpop.f32.mrb[23].mxu1 }
 0x213   :  { %v1916_v6 = vadd.f32 %v5518_v60, %v1915_v4 }
 0x214   :  { %v1336_v7 = vmax.f32 %v1020_v0, 0.0  ;;  %v2515_v8 = vmax.f32 %v1921_v1, 0.0  ;;  %1231 = vmatmul.mubr.bf16.gmra.mrb[236].mxu0 %v404_v56  ;;  %4112 = vmatprep.mubr.msk.f32.mxu1 %vm1414_vm1, %v1335_v62 }
 0x215   :  { %v2514_v9 = vmax.f32 %v1916_v6, 0.0  ;;  %3463 = vmatprep.mubr.msk.bf16.mxu0 %vm533_vm0, %v407_v61 }
 0x216   :  { %4113 = vmatmul.mubr.msk.f32.gmra.mrb[76].mxu1 %vm1414_vm1, %v1336_v7 }
 0x217   :  { %v5643_v11 = vpack.c.bf16 %v2515_v8, %v2514_v9  ;;  %v1024_v12 = vpop.f32.mrb[132].mxu0 }
 0x218   :  { %v1025_v13 = vadd.f32 %v5524_v5, %v1024_v12  ;;  %v1026_v14 = vpop.f32.mrb[133].mxu0 }
 0x219   :  { %v1027_v16 = vpop.f32.mrb[134].mxu0  ;;  %v4036_v18 = vpop.f32.mrb[24].mxu1 }
 0x21a   :  { %v1337_v20 = vmax.f32 %v1025_v13, 0.0  ;;  %v1028_v21 = vadd.f32 %v5524_v5, %v1027_v16  ;;  %v1931_v22 = vadd.f32 %v4036_v18, %v5518_v60  ;;  %v1029_v23 = vpop.f32.mrb[135].mxu0  ;;  %v1925_v24 = vpop.f32.mrb[25].mxu1 }
 0x21b   :  { %v1926_v25 = vadd.f32 %v5518_v60, %v1925_v24 }
 0x21c   :  { %v1338_v27 = vmax.f32 %v1028_v21, 0.0  ;;  %v2517_v28 = vmax.f32 %v1931_v22, 0.0  ;;  %1239 = vmatmul.mubr.bf16.gmra.mrb[240].mxu0 %v406_v15  ;;  %4115 = vmatprep.mubr.msk.f32.mxu1 %vm1414_vm1, %v1337_v20 }
 0x21d   :  { %v2516_v29 = vmax.f32 %v1926_v25, 0.0 }
 0x21e   :  { %4116 = vmatmul.mubr.msk.f32.gmra.mrb[78].mxu1 %vm1414_vm1, %v1338_v27 }
 0x21f   :  { %v5651_v30 = vpack.c.bf16 %v2517_v28, %v2516_v29  ;;  %v1032_v31 = vpop.f32.mrb[136].mxu0 }
 0x220   :  { %v1033_v32 = vadd.f32 %v5524_v5, %v1032_v31  ;;  %v1034_v33 = vpop.f32.mrb[137].mxu0 }
 0x221   :  { %v1035_v35 = vpop.f32.mrb[138].mxu0  ;;  %v4039_v36 = vpop.f32.mrb[26].mxu1 }
 0x222   :  { %v1339_v37 = vmax.f32 %v1033_v32, 0.0  ;;  %v1036_v38 = vadd.f32 %v5524_v5, %v1035_v35  ;;  %v1941_v39 = vadd.f32 %v4039_v36, %v5518_v60  ;;  %v1037_v42 = vpop.f32.mrb[139].mxu0  ;;  %v1935_v43 = vpop.f32.mrb[27].mxu1 }
 0x223   :  { %v1936_v44 = vadd.f32 %v5518_v60, %v1935_v43 }
 0x224   :  { %v1340_v45 = vmax.f32 %v1036_v38, 0.0  ;;  %v2519_v46 = vmax.f32 %v1941_v39, 0.0  ;;  %4118 = vmatprep.mubr.msk.f32.mxu1 %vm1414_vm1, %v1339_v37 }
 0x225   :  { %v2518_v47 = vmax.f32 %v1936_v44, 0.0 }
 0x226   :  { %4119 = vmatmul.mubr.msk.f32.gmra.mrb[80].mxu1 %vm1414_vm1, %v1340_v45 }
 0x227   :  { %v5659_v49 = vpack.c.bf16 %v2519_v46, %v2518_v47  ;;  %v1040_v50 = vpop.f32.mrb[140].mxu0 }
 0x228   :  { %v1041_v52 = vadd.f32 %v5524_v5, %v1040_v50  ;;  %v1042_v54 = vpop.f32.mrb[141].mxu0 }
 0x229   :  { %v1043_v55 = vpop.f32.mrb[142].mxu0  ;;  %v4042_v56 = vpop.f32.mrb[28].mxu1 }
 0x22a   :  { %v1341_v57 = vmax.f32 %v1041_v52, 0.0  ;;  %v1044_v59 = vadd.f32 %v5524_v5, %v1043_v55  ;;  %v1951_v61 = vadd.f32 %v4042_v56, %v5518_v60  ;;  %v1045_v62 = vpop.f32.mrb[143].mxu0  ;;  %v1945_v0 = vpop.f32.mrb[29].mxu1 }
 0x22b   :  { %v1946_v1 = vadd.f32 %v5518_v60, %v1945_v0 }
 0x22c   :  { %v1342_v2 = vmax.f32 %v1044_v59, 0.0  ;;  %v2521_v4 = vmax.f32 %v1951_v61, 0.0  ;;  %4121 = vmatprep.mubr.msk.f32.mxu1 %vm1414_vm1, %v1341_v57 }
 0x22d   :  { %v2520_v6 = vmax.f32 %v1946_v1, 0.0 }
 0x22e   :  { %4122 = vmatmul.mubr.msk.f32.gmra.mrb[82].mxu1 %vm1414_vm1, %v1342_v2 }
 0x22f   :  { %v4224_v8 = vpack.c.bf16 %v2521_v4, %v2520_v6  ;;  %v1048_v9 = vpop.f32.mrb[144].mxu0 }
 0x230   :  { %v1049_v10 = vadd.f32 %v5524_v5, %v1048_v9  ;;  %v1050_v19 = vpop.f32.mrb[145].mxu0 }
 0x231   :  { %v1051_v12 = vpop.f32.mrb[146].mxu0  ;;  %v4045_v13 = vpop.f32.mrb[30].mxu1  ;;  %4226 = vmatprep.subr.msk.bf16.mxu1 %vm5669_vm3, %v4224_v8 }
 0x232   :  { %v1343_v14 = vmax.f32 %v1049_v10, 0.0  ;;  %v1052_v15 = vadd.f32 %v5524_v5, %v1051_v12  ;;  %v1961_v16 = vadd.f32 %v4045_v13, %v5518_v60  ;;  %v1053_v18 = vpop.f32.mrb[147].mxu0  ;;  %v1955_v20 = vpop.f32.mrb[31].mxu1  ;;  %4229 = vmatpush3.bf16.xpose.msk.msra.mxu1 %vm5669_vm3, %v5544_v17 }
 0x233   :  { %v1956_v21 = vadd.f32 %v5518_v60, %v1955_v20 }
 0x234   :  { %v1344_v22 = vmax.f32 %v1052_v15, 0.0  ;;  %v2523_v23 = vmax.f32 %v1961_v16, 0.0  ;;  %4124 = vmatprep.mubr.msk.f32.mxu1 %vm1414_vm1, %v1343_v14 }
 0x235   :  { %v2522_v24 = vmax.f32 %v1956_v21, 0.0 }
 0x236   :  { %4125 = vmatmul.mubr.msk.f32.gmra.mrb[84].mxu1 %vm1414_vm1, %v1344_v22 }
 0x237   :  { %v4230_v25 = vpack.c.bf16 %v2523_v23, %v2522_v24  ;;  %v1056_v27 = vpop.f32.mrb[148].mxu0 }
 0x238   :  { %v1057_v28 = vadd.f32 %v5524_v5, %v1056_v27  ;;  %v1058_v29 = vpop.f32.mrb[149].mxu0 }
 0x239   :  { %v1059_v31 = vpop.f32.mrb[150].mxu0  ;;  %v4048_v32 = vpop.f32.mrb[32].mxu1  ;;  %4232 = vmatprep.subr.msk.bf16.mxu1 %vm5669_vm3, %v4230_v25 }
 0x23a   :  { %v1345_v17 = vmax.f32 %v1057_v28, 0.0  ;;  %v1060_v33 = vadd.f32 %v5524_v5, %v1059_v31  ;;  %v1971_v35 = vadd.f32 %v4048_v32, %v5518_v60  ;;  %v1061_v36 = vpop.f32.mrb[151].mxu0  ;;  %v1965_v37 = vpop.f32.mrb[33].mxu1  ;;  %4235 = vmatpush3.bf16.xpose.msk.msra.mxu1 %vm5669_vm3, %v5565_v40 }
 0x23b   :  { %v1966_v38 = vadd.f32 %v5518_v60, %v1965_v37 }
 0x23c   :  { %v1346_v39 = vmax.f32 %v1060_v33, 0.0  ;;  %v2525_v42 = vmax.f32 %v1971_v35, 0.0  ;;  %4127 = vmatprep.mubr.msk.f32.mxu1 %vm1414_vm1, %v1345_v17 }
 0x23d   :  { %v2524_v43 = vmax.f32 %v1966_v38, 0.0 }
 0x23e   :  { %4128 = vmatmul.mubr.msk.f32.gmra.mrb[86].mxu1 %vm1414_vm1, %v1346_v39 }
 0x23f   :  { %v4236_v44 = vpack.c.bf16 %v2525_v42, %v2524_v43  ;;  %v1064_v45 = vpop.f32.mrb[152].mxu0 }
 0x240   :  { %v1065_v46 = vadd.f32 %v5524_v5, %v1064_v45  ;;  %v1066_v47 = vpop.f32.mrb[153].mxu0 }
 0x241   :  { %v1067_v50 = vpop.f32.mrb[154].mxu0  ;;  %v4051_v52 = vpop.f32.mrb[34].mxu1  ;;  %4238 = vmatprep.subr.msk.bf16.mxu1 %vm5669_vm3, %v4236_v44 }
 0x242   :  { %v1347_v40 = vmax.f32 %v1065_v46, 0.0  ;;  %v1068_v54 = vadd.f32 %v5524_v5, %v1067_v50  ;;  %v1981_v55 = vadd.f32 %v4051_v52, %v5518_v60  ;;  %v1069_v56 = vpop.f32.mrb[155].mxu0  ;;  %v1975_v57 = vpop.f32.mrb[35].mxu1  ;;  %4241 = vmatpush3.bf16.xpose.msk.msra.mxu1 %vm5669_vm3, %v5586_v3 }
 0x243   :  { %v1976_v59 = vadd.f32 %v5518_v60, %v1975_v57 }
 0x244   :  { %v1348_v61 = vmax.f32 %v1068_v54, 0.0  ;;  %v2527_v62 = vmax.f32 %v1981_v55, 0.0  ;;  %4130 = vmatprep.mubr.msk.f32.mxu1 %vm1414_vm1, %v1347_v40 }
 0x245   :  { %v2526_v0 = vmax.f32 %v1976_v59, 0.0 }
 0x246   :  { %4131 = vmatmul.mubr.msk.f32.gmra.mrb[88].mxu1 %vm1414_vm1, %v1348_v61 }
 0x247   :  { %v4242_v1 = vpack.c.bf16 %v2527_v62, %v2526_v0  ;;  %v1072_v2 = vpop.f32.mrb[156].mxu0 }
 0x248   :  { %v1073_v4 = vadd.f32 %v5524_v5, %v1072_v2  ;;  %v1074_v6 = vpop.f32.mrb[157].mxu0 }
 0x249   :  { %v1075_v8 = vpop.f32.mrb[158].mxu0  ;;  %v4054_v9 = vpop.f32.mrb[36].mxu1  ;;  %4244 = vmatprep.subr.msk.bf16.mxu1 %vm5669_vm3, %v4242_v1 }
 0x24a   :  { %v1349_v3 = vmax.f32 %v1073_v4, 0.0  ;;  %v1076_v10 = vadd.f32 %v5524_v5, %v1075_v8  ;;  %v1991_v19 = vadd.f32 %v4054_v9, %v5518_v60  ;;  %v1077_v12 = vpop.f32.mrb[159].mxu0  ;;  %v1985_v13 = vpop.f32.mrb[37].mxu1  ;;  %4247 = vmatpush3.bf16.xpose.msk.msra.mxu1 %vm5669_vm3, %v5607_v26 }
 0x24b   :  { %v1986_v14 = vadd.f32 %v5518_v60, %v1985_v13 }
 0x24c   :  { %v1350_v15 = vmax.f32 %v1076_v10, 0.0  ;;  %v2529_v16 = vmax.f32 %v1991_v19, 0.0  ;;  %4133 = vmatprep.mubr.msk.f32.mxu1 %vm1414_vm1, %v1349_v3 }
 0x24d   :  { %v2528_v18 = vmax.f32 %v1986_v14, 0.0 }
 0x24e   :  { %4134 = vmatmul.mubr.msk.f32.gmra.mrb[90].mxu1 %vm1414_vm1, %v1350_v15 }
 0x24f   :  { %v4248_v20 = vpack.c.bf16 %v2529_v16, %v2528_v18  ;;  %v1080_v21 = vpop.f32.mrb[160].mxu0 }
 0x250   :  { %v1081_v22 = vadd.f32 %v5524_v5, %v1080_v21  ;;  %v1082_v23 = vpop.f32.mrb[161].mxu0 }
 0x251   :  { %v1083_v24 = vpop.f32.mrb[162].mxu0  ;;  %v4057_v25 = vpop.f32.mrb[38].mxu1  ;;  %4250 = vmatprep.subr.msk.bf16.mxu1 %vm5669_vm3, %v4248_v20 }
 0x252   :  { %v1351_v26 = vmax.f32 %v1081_v22, 0.0  ;;  %v1084_v27 = vadd.f32 %v5524_v5, %v1083_v24  ;;  %v2001_v28 = vadd.f32 %v4057_v25, %v5518_v60  ;;  %v1085_v29 = vpop.f32.mrb[163].mxu0  ;;  %v1995_v31 = vpop.f32.mrb[39].mxu1  ;;  %4253 = vmatpush3.bf16.xpose.msk.msra.mxu1 %vm5669_vm3, %v5628_v51 }
 0x253   :  { %v1996_v32 = vadd.f32 %v5518_v60, %v1995_v31 }
 0x254   :  { %v1352_v17 = vmax.f32 %v1084_v27, 0.0  ;;  %v2531_v33 = vmax.f32 %v2001_v28, 0.0  ;;  %4136 = vmatprep.mubr.msk.f32.mxu1 %vm1414_vm1, %v1351_v26 }
 0x255   :  { %v2530_v35 = vmax.f32 %v1996_v32, 0.0 }
 0x256   :  { %4137 = vmatmul.mubr.msk.f32.gmra.mrb[92].mxu1 %vm1414_vm1, %v1352_v17 }
 0x257   :  { %v4254_v36 = vpack.c.bf16 %v2531_v33, %v2530_v35  ;;  %v1088_v37 = vpop.f32.mrb[164].mxu0 }
 0x258   :  { %v1089_v38 = vadd.f32 %v5524_v5, %v1088_v37  ;;  %v1090_v39 = vpop.f32.mrb[165].mxu0 }
 0x259   :  { %v1091_v42 = vpop.f32.mrb[166].mxu0  ;;  %v4060_v43 = vpop.f32.mrb[40].mxu1  ;;  %4256 = vmatprep.subr.msk.bf16.mxu1 %vm5669_vm3, %v4254_v36 }
 0x25a   :  { %v1353_v51 = vmax.f32 %v1089_v38, 0.0  ;;  %v1092_v44 = vadd.f32 %v5524_v5, %v1091_v42  ;;  %v2011_v45 = vadd.f32 %v4060_v43, %v5518_v60  ;;  %v1093_v46 = vpop.f32.mrb[167].mxu0  ;;  %v2005_v47 = vpop.f32.mrb[41].mxu1  ;;  %4259 = vmatpush3.bf16.xpose.msk.msra.mxu1 %vm5669_vm3, %v5643_v11 }
 0x25b   :  { %v2006_v50 = vadd.f32 %v5518_v60, %v2005_v47 }
 0x25c   :  { %v1354_v52 = vmax.f32 %v1092_v44, 0.0  ;;  %v2533_v40 = vmax.f32 %v2011_v45, 0.0  ;;  %4139 = vmatprep.mubr.msk.f32.mxu1 %vm1414_vm1, %v1353_v51 }
 0x25d   :  { %v2532_v54 = vmax.f32 %v2006_v50, 0.0 }
 0x25e   :  { %4140 = vmatmul.mubr.msk.f32.gmra.mrb[94].mxu1 %vm1414_vm1, %v1354_v52 }
 0x25f   :  { %v4260_v55 = vpack.c.bf16 %v2533_v40, %v2532_v54  ;;  %v1096_v56 = vpop.f32.mrb[168].mxu0 }
 0x260   :  { %v1097_v57 = vadd.f32 %v5524_v5, %v1096_v56  ;;  %v1098_v59 = vpop.f32.mrb[169].mxu0 }
 0x261   :  { %v1099_v61 = vpop.f32.mrb[170].mxu0  ;;  %v4063_v62 = vpop.f32.mrb[42].mxu1  ;;  %4262 = vmatprep.subr.msk.bf16.mxu1 %vm5669_vm3, %v4260_v55 }
 0x262   :  { %v1355_v11 = vmax.f32 %v1097_v57, 0.0  ;;  %v1100_v0 = vadd.f32 %v5524_v5, %v1099_v61  ;;  %v2021_v1 = vadd.f32 %v4063_v62, %v5518_v60  ;;  %v1101_v2 = vpop.f32.mrb[171].mxu0  ;;  %v2015_v4 = vpop.f32.mrb[43].mxu1  ;;  %4265 = vmatpush3.bf16.xpose.msk.msra.mxu1 %vm5669_vm3, %v5651_v30 }
 0x263   :  { %v2016_v6 = vadd.f32 %v5518_v60, %v2015_v4 }
 0x264   :  { %v1356_v8 = vmax.f32 %v1100_v0, 0.0  ;;  %v2535_v9 = vmax.f32 %v2021_v1, 0.0  ;;  %4142 = vmatprep.mubr.msk.f32.mxu1 %vm1414_vm1, %v1355_v11 }
 0x265   :  { %v2534_v3 = vmax.f32 %v2016_v6, 0.0 }
 0x266   :  { %4143 = vmatmul.mubr.msk.f32.gmra.mrb[96].mxu1 %vm1414_vm1, %v1356_v8 }
 0x267   :  { %v4266_v10 = vpack.c.bf16 %v2535_v9, %v2534_v3  ;;  %v1104_v19 = vpop.f32.mrb[172].mxu0 }
 0x268   :  { %v1105_v12 = vadd.f32 %v5524_v5, %v1104_v19  ;;  %v1106_v13 = vpop.f32.mrb[173].mxu0 }
 0x269   :  { %v1107_v14 = vpop.f32.mrb[174].mxu0  ;;  %v4066_v15 = vpop.f32.mrb[44].mxu1  ;;  %4268 = vmatprep.subr.msk.bf16.mxu1 %vm5669_vm3, %v4266_v10 }
 0x26a   :  { %v1357_v30 = vmax.f32 %v1105_v12, 0.0  ;;  %v1108_v16 = vadd.f32 %v5524_v5, %v1107_v14  ;;  %v2031_v18 = vadd.f32 %v4066_v15, %v5518_v60  ;;  %v1109_v20 = vpop.f32.mrb[175].mxu0  ;;  %v2025_v21 = vpop.f32.mrb[45].mxu1  ;;  %4271 = vmatpush3.bf16.xpose.msk.msra.mxu1 %vm5669_vm3, %v5659_v49 }
 0x26b   :  { %v2026_v22 = vadd.f32 %v5518_v60, %v2025_v21 }
 0x26c   :  { %v1358_v23 = vmax.f32 %v1108_v16, 0.0  ;;  %v2537_v24 = vmax.f32 %v2031_v18, 0.0  ;;  %4145 = vmatprep.mubr.msk.f32.mxu1 %vm1414_vm1, %v1357_v30 }
 0x26d   :  { %v2536_v25 = vmax.f32 %v2026_v22, 0.0 }
 0x26e   :  { %4146 = vmatmul.mubr.msk.f32.gmra.mrb[98].mxu1 %vm1414_vm1, %v1358_v23 }
 0x26f   :  { %v5761_v26 = vpack.c.bf16 %v2537_v24, %v2536_v25  ;;  %v1112_v27 = vpop.f32.mrb[176].mxu0 }
 0x270   :  { %v1113_v28 = vadd.f32 %v5524_v5, %v1112_v27  ;;  %v1114_v29 = vpop.f32.mrb[177].mxu0 }
 0x271   :  { %v1115_v31 = vpop.f32.mrb[178].mxu0  ;;  %v4069_v32 = vpop.f32.mrb[46].mxu1 }
 0x272   :  { %v1359_v17 = vmax.f32 %v1113_v28, 0.0  ;;  %v1116_v49 = vadd.f32 %v5524_v5, %v1115_v31  ;;  %v2041_v33 = vadd.f32 %v4069_v32, %v5518_v60  ;;  %v1117_v35 = vpop.f32.mrb[179].mxu0  ;;  %v2035_v36 = vpop.f32.mrb[47].mxu1 }
 0x273   :  { %v2036_v37 = vadd.f32 %v5518_v60, %v2035_v36 }
 0x274   :  { %v1360_v38 = vmax.f32 %v1116_v49, 0.0  ;;  %v2539_v39 = vmax.f32 %v2041_v33, 0.0  ;;  %4148 = vmatprep.mubr.msk.f32.mxu1 %vm1414_vm1, %v1359_v17 }
 0x275   :  { %v2538_v42 = vmax.f32 %v2036_v37, 0.0 }
 0x276   :  { %4149 = vmatmul.mubr.msk.f32.gmra.mrb[100].mxu1 %vm1414_vm1, %v1360_v38 }
 0x277   :  { %v5769_v43 = vpack.c.bf16 %v2539_v39, %v2538_v42  ;;  %v1120_v51 = vpop.f32.mrb[180].mxu0 }
 0x278   :  { %v1121_v44 = vadd.f32 %v5524_v5, %v1120_v51  ;;  %v1122_v45 = vpop.f32.mrb[181].mxu0 }
 0x279   :  { %v1123_v46 = vpop.f32.mrb[182].mxu0  ;;  %v4072_v47 = vpop.f32.mrb[48].mxu1 }
 0x27a   :  { %v1361_v50 = vmax.f32 %v1121_v44, 0.0  ;;  %v1124_v52 = vadd.f32 %v5524_v5, %v1123_v46  ;;  %v2051_v40 = vadd.f32 %v4072_v47, %v5518_v60  ;;  %v1125_v54 = vpop.f32.mrb[183].mxu0  ;;  %v2045_v55 = vpop.f32.mrb[49].mxu1 }
 0x27b   :  { %v2046_v56 = vadd.f32 %v5518_v60, %v2045_v55 }
 0x27c   :  { %v1362_v57 = vmax.f32 %v1124_v52, 0.0  ;;  %v2541_v59 = vmax.f32 %v2051_v40, 0.0  ;;  %4151 = vmatprep.mubr.msk.f32.mxu1 %vm1414_vm1, %v1361_v50 }
 0x27d   :  { %v2540_v61 = vmax.f32 %v2046_v56, 0.0 }
 0x27e   :  { %4152 = vmatmul.mubr.msk.f32.gmra.mrb[102].mxu1 %vm1414_vm1, %v1362_v57 }
 0x27f   :  { %v5777_v62 = vpack.c.bf16 %v2541_v59, %v2540_v61  ;;  %v1128_v11 = vpop.f32.mrb[184].mxu0 }
 0x280   :  { %v1129_v0 = vadd.f32 %v5524_v5, %v1128_v11  ;;  %v1130_v1 = vpop.f32.mrb[185].mxu0 }
 0x281   :  { %v1131_v2 = vpop.f32.mrb[186].mxu0  ;;  %v4075_v4 = vpop.f32.mrb[50].mxu1 }
 0x282   :  { %v1363_v6 = vmax.f32 %v1129_v0, 0.0  ;;  %v1132_v8 = vadd.f32 %v5524_v5, %v1131_v2  ;;  %v2061_v9 = vadd.f32 %v4075_v4, %v5518_v60  ;;  %v1133_v3 = vpop.f32.mrb[187].mxu0  ;;  %v2055_v10 = vpop.f32.mrb[51].mxu1 }
 0x283   :  { %v2056_v19 = vadd.f32 %v5518_v60, %v2055_v10 }
 0x284   :  { %v1364_v12 = vmax.f32 %v1132_v8, 0.0  ;;  %v2543_v13 = vmax.f32 %v2061_v9, 0.0  ;;  %4154 = vmatprep.mubr.msk.f32.mxu1 %vm1414_vm1, %v1363_v6 }
 0x285   :  { %v2542_v14 = vmax.f32 %v2056_v19, 0.0 }
 0x286   :  { %4155 = vmatmul.mubr.msk.f32.gmra.mrb[104].mxu1 %vm1414_vm1, %v1364_v12 }
 0x287   :  { %v5785_v15 = vpack.c.bf16 %v2543_v13, %v2542_v14  ;;  %v1136_v30 = vpop.f32.mrb[188].mxu0 }
 0x288   :  { %v1137_v16 = vadd.f32 %v5524_v5, %v1136_v30  ;;  %v1138_v18 = vpop.f32.mrb[189].mxu0 }
 0x289   :  { %v1139_v20 = vpop.f32.mrb[190].mxu0  ;;  %v4078_v21 = vpop.f32.mrb[52].mxu1 }
 0x28a   :  { %v1365_v22 = vmax.f32 %v1137_v16, 0.0  ;;  %v1140_v23 = vadd.f32 %v5524_v5, %v1139_v20  ;;  %v2071_v24 = vadd.f32 %v4078_v21, %v5518_v60  ;;  %v1141_v25 = vpop.f32.mrb[191].mxu0  ;;  %v2065_v27 = vpop.f32.mrb[53].mxu1 }
 0x28b   :  { %v2066_v28 = vadd.f32 %v5518_v60, %v2065_v27 }
 0x28c   :  { %v1366_v29 = vmax.f32 %v1140_v23, 0.0  ;;  %v2545_v31 = vmax.f32 %v2071_v24, 0.0  ;;  %4157 = vmatprep.mubr.msk.f32.mxu1 %vm1414_vm1, %v1365_v22 }
 0x28d   :  { %v2544_v32 = vmax.f32 %v2066_v28, 0.0 }
 0x28e   :  { %4158 = vmatmul.mubr.msk.f32.gmra.mrb[106].mxu1 %vm1414_vm1, %v1366_v29 }
 0x28f   :  { %v5793_v17 = vpack.c.bf16 %v2545_v31, %v2544_v32  ;;  %v1144_v49 = vpop.f32.mrb[192].mxu0 }
 0x290   :  { %v1145_v33 = vadd.f32 %v5524_v5, %v1144_v49  ;;  %v1146_v35 = vpop.f32.mrb[193].mxu0 }
 0x291   :  { %v1147_v36 = vpop.f32.mrb[194].mxu0  ;;  %v4081_v37 = vpop.f32.mrb[54].mxu1 }
 0x292   :  { %v1367_v38 = vmax.f32 %v1145_v33, 0.0  ;;  %v1148_v39 = vadd.f32 %v5524_v5, %v1147_v36  ;;  %v2081_v42 = vadd.f32 %v4081_v37, %v5518_v60  ;;  %v1149_v51 = vpop.f32.mrb[195].mxu0  ;;  %v2075_v44 = vpop.f32.mrb[55].mxu1 }
 0x293   :  { %v2076_v45 = vadd.f32 %v5518_v60, %v2075_v44 }
 0x294   :  { %v1368_v46 = vmax.f32 %v1148_v39, 0.0  ;;  %v2547_v47 = vmax.f32 %v2081_v42, 0.0  ;;  %4160 = vmatprep.mubr.msk.f32.mxu1 %vm1414_vm1, %v1367_v38 }
 0x295   :  { %v2546_v50 = vmax.f32 %v2076_v45, 0.0 }
 0x296   :  { %4161 = vmatmul.mubr.msk.f32.gmra.mrb[108].mxu1 %vm1414_vm1, %v1368_v46 }
 0x297   :  { %v5801_v52 = vpack.c.bf16 %v2547_v47, %v2546_v50  ;;  %v1152_v40 = vpop.f32.mrb[196].mxu0 }
 0x298   :  { %v1153_v54 = vadd.f32 %v5524_v5, %v1152_v40  ;;  %v1154_v55 = vpop.f32.mrb[197].mxu0 }
 0x299   :  { %v1155_v56 = vpop.f32.mrb[198].mxu0  ;;  %v4084_v57 = vpop.f32.mrb[56].mxu1 }
 0x29a   :  { %v1369_v59 = vmax.f32 %v1153_v54, 0.0  ;;  %v1156_v61 = vadd.f32 %v5524_v5, %v1155_v56  ;;  %v2091_v11 = vadd.f32 %v4084_v57, %v5518_v60  ;;  %v1157_v0 = vpop.f32.mrb[199].mxu0  ;;  %v2085_v1 = vpop.f32.mrb[57].mxu1 }
 0x29b   :  { %v2086_v2 = vadd.f32 %v5518_v60, %v2085_v1 }
 0x29c   :  { %v1370_v4 = vmax.f32 %v1156_v61, 0.0  ;;  %v2549_v6 = vmax.f32 %v2091_v11, 0.0  ;;  %4163 = vmatprep.mubr.msk.f32.mxu1 %vm1414_vm1, %v1369_v59 }
 0x29d   :  { %v2548_v8 = vmax.f32 %v2086_v2, 0.0 }
 0x29e   :  { %4164 = vmatmul.mubr.msk.f32.gmra.mrb[110].mxu1 %vm1414_vm1, %v1370_v4 }
 0x29f   :  { %v5809_v9 = vpack.c.bf16 %v2549_v6, %v2548_v8  ;;  %v1160_v3 = vpop.f32.mrb[200].mxu0 }
 0x2a0   :  { %v1161_v10 = vadd.f32 %v5524_v5, %v1160_v3  ;;  %v1162_v19 = vpop.f32.mrb[201].mxu0 }
 0x2a1   :  { %v1163_v12 = vpop.f32.mrb[202].mxu0  ;;  %v4087_v13 = vpop.f32.mrb[58].mxu1 }
 0x2a2   :  { %v1371_v14 = vmax.f32 %v1161_v10, 0.0  ;;  %v1164_v30 = vadd.f32 %v5524_v5, %v1163_v12  ;;  %v2101_v16 = vadd.f32 %v4087_v13, %v5518_v60  ;;  %v1165_v18 = vpop.f32.mrb[203].mxu0  ;;  %v2095_v20 = vpop.f32.mrb[59].mxu1 }
 0x2a3   :  { %v2096_v21 = vadd.f32 %v5518_v60, %v2095_v20 }
 0x2a4   :  { %v1372_v22 = vmax.f32 %v1164_v30, 0.0  ;;  %v2551_v23 = vmax.f32 %v2101_v16, 0.0  ;;  %4166 = vmatprep.mubr.msk.f32.mxu1 %vm1414_vm1, %v1371_v14 }
 0x2a5   :  { %v2550_v24 = vmax.f32 %v2096_v21, 0.0 }
 0x2a6   :  { %4167 = vmatmul.mubr.msk.f32.gmra.mrb[112].mxu1 %vm1414_vm1, %v1372_v22 }
 0x2a7   :  { %v5817_v25 = vpack.c.bf16 %v2551_v23, %v2550_v24  ;;  %v1168_v27 = vpop.f32.mrb[204].mxu0  ;;  %v5851_v23 = vld [vmem:[%s6175_s2] ss:$0 sm:$0xff] }
 0x2a8   :  { %v1169_v28 = vadd.f32 %v5524_v5, %v1168_v27  ;;  %v1170_v29 = vpop.f32.mrb[205].mxu0 }
 0x2a9   :  { %v1171_v31 = vpop.f32.mrb[206].mxu0  ;;  %v4090_v32 = vpop.f32.mrb[60].mxu1 }
 0x2aa   :  { %v1373_v49 = vmax.f32 %v1169_v28, 0.0  ;;  %v1172_v33 = vadd.f32 %v5524_v5, %v1171_v31  ;;  %v2111_v35 = vadd.f32 %v4090_v32, %v5518_v60  ;;  %v1173_v36 = vpop.f32.mrb[207].mxu0  ;;  %v2105_v37 = vpop.f32.mrb[61].mxu1 }
 0x2ab   :  { %v2106_v38 = vadd.f32 %v5518_v60, %v2105_v37 }
 0x2ac   :  { %v1374_v39 = vmax.f32 %v1172_v33, 0.0  ;;  %v2553_v42 = vmax.f32 %v2111_v35, 0.0  ;;  %4169 = vmatprep.mubr.msk.f32.mxu1 %vm1414_vm1, %v1373_v49 }
 0x2ad   :  { %v2552_v51 = vmax.f32 %v2106_v38, 0.0 }
 0x2ae   :  { %4170 = vmatmul.mubr.msk.f32.gmra.mrb[114].mxu1 %vm1414_vm1, %v1374_v39 }
 0x2af   :  { %v4272_v44 = vpack.c.bf16 %v2553_v42, %v2552_v51  ;;  %v1176_v45 = vpop.f32.mrb[208].mxu0 }
 0x2b0   :  { %v1177_v46 = vadd.f32 %v5524_v5, %v1176_v45  ;;  %v1178_v47 = vpop.f32.mrb[209].mxu0 }
 0x2b1   :  { %v1179_v50 = vpop.f32.mrb[210].mxu0  ;;  %v4093_v40 = vpop.f32.mrb[62].mxu1  ;;  %4274 = vmatprep.subr.msk.bf16.mxu1 %vm5669_vm3, %v4272_v44 }
 0x2b2   :  { %v1375_v54 = vmax.f32 %v1177_v46, 0.0  ;;  %v1180_v55 = vadd.f32 %v5524_v5, %v1179_v50  ;;  %v2121_v56 = vadd.f32 %v4093_v40, %v5518_v60  ;;  %v1181_v57 = vpop.f32.mrb[211].mxu0  ;;  %v2115_v59 = vpop.f32.mrb[63].mxu1 }
 0x2b3   :  { %v2116_v61 = vadd.f32 %v5518_v60, %v2115_v59  ;;  %v5840_v60 = vld [vmem:[%s6177_s4] ss:$0 sm:$0xff] }
 0x2b4   :  { %v1376_v11 = vmax.f32 %v1180_v55, 0.0  ;;  %v2555_v0 = vmax.f32 %v2121_v56, 0.0  ;;  %4172 = vmatprep.mubr.msk.f32.mxu1 %vm1414_vm1, %v1375_v54 }
 0x2b5   :  { %v2554_v1 = vmax.f32 %v2116_v61, 0.0 }
 0x2b6   :  { %4173 = vmatmul.mubr.msk.f32.gmra.mrb[116].mxu1 %vm1414_vm1, %v1376_v11 }
 0x2b7   :  { %v5833_v2 = vpack.c.bf16 %v2555_v0, %v2554_v1  ;;  %v1184_v4 = vpop.f32.mrb[212].mxu0 }
 0x2b8   :  { %v1185_v6 = vadd.f32 %v5524_v5, %v1184_v4  ;;  %v1186_v8 = vpop.f32.mrb[213].mxu0 }
 0x2b9   :  { %v1187_v3 = vpop.f32.mrb[214].mxu0  ;;  %v4096_v10 = vpop.f32.mrb[64].mxu1 }
 0x2ba   :  { %v1377_v19 = vmax.f32 %v1185_v6, 0.0  ;;  %v1188_v12 = vadd.f32 %v5524_v5, %v1187_v3  ;;  %v2131_v13 = vadd.f32 %v5840_v60, %v4096_v10  ;;  %v1189_v14 = vpop.f32.mrb[215].mxu0  ;;  %v2125_v30 = vpop.f32.mrb[65].mxu1 }
 0x2bb   :  { %v2126_v16 = vadd.f32 %v5840_v60, %v2125_v30 }
 0x2bc   :  { %v1378_v18 = vmax.f32 %v1188_v12, 0.0  ;;  %v2557_v20 = vmax.f32 %v2131_v13, 0.0  ;;  %4175 = vmatprep.mubr.msk.f32.mxu1 %vm1414_vm1, %v1377_v19 }
 0x2bd   :  { %v2556_v21 = vmax.f32 %v2126_v16, 0.0 }
 0x2be   :  { %4176 = vmatmul.mubr.msk.f32.gmra.mrb[118].mxu1 %vm1414_vm1, %v1378_v18 }
 0x2bf   :  { %v5846_v22 = vpack.c.bf16 %v2557_v20, %v2556_v21  ;;  %v1192_v5 = vpop.f32.mrb[216].mxu0 }
 0x2c0   :  { %v1193_v24 = vadd.f32 %v5851_v23, %v1192_v5  ;;  %v1194_v27 = vpop.f32.mrb[217].mxu0 }
 0x2c1   :  { %v1195_v28 = vpop.f32.mrb[218].mxu0  ;;  %v4099_v29 = vpop.f32.mrb[66].mxu1 }
 0x2c2   :  { %v1379_v31 = vmax.f32 %v1193_v24, 0.0  ;;  %v1196_v32 = vadd.f32 %v5851_v23, %v1195_v28  ;;  %v2141_v49 = vadd.f32 %v5840_v60, %v4099_v29  ;;  %v1197_v33 = vpop.f32.mrb[219].mxu0  ;;  %v2135_v35 = vpop.f32.mrb[67].mxu1 }
 0x2c3   :  { %v2136_v36 = vadd.f32 %v5840_v60, %v2135_v35 }
 0x2c4   :  { %v1380_v37 = vmax.f32 %v1196_v32, 0.0  ;;  %v2559_v38 = vmax.f32 %v2141_v49, 0.0  ;;  %4178 = vmatprep.mubr.msk.f32.mxu1 %vm1414_vm1, %v1379_v31 }
 0x2c5   :  { %v2558_v39 = vmax.f32 %v2136_v36, 0.0 }
 0x2c6   :  { %4179 = vmatmul.mubr.msk.f32.gmra.mrb[120].mxu1 %vm1414_vm1, %v1380_v37 }
 0x2c7   :  { %v5859_v42 = vpack.c.bf16 %v2559_v38, %v2558_v39  ;;  %v1200_v51 = vpop.f32.mrb[220].mxu0 }
 0x2c8   :  { %v1201_v44 = vadd.f32 %v5851_v23, %v1200_v51  ;;  %v1202_v45 = vpop.f32.mrb[221].mxu0 }
 0x2c9   :  { %v1203_v46 = vpop.f32.mrb[222].mxu0  ;;  %v4102_v47 = vpop.f32.mrb[68].mxu1 }
 0x2ca   :  { %v1381_v50 = vmax.f32 %v1201_v44, 0.0  ;;  %v1204_v40 = vadd.f32 %v5851_v23, %v1203_v46  ;;  %v2151_v54 = vadd.f32 %v5840_v60, %v4102_v47  ;;  %v1205_v55 = vpop.f32.mrb[223].mxu0  ;;  %v2145_v56 = vpop.f32.mrb[69].mxu1 }
 0x2cb   :  { %v2146_v57 = vadd.f32 %v5840_v60, %v2145_v56 }
 0x2cc   :  { %v1382_v59 = vmax.f32 %v1204_v40, 0.0  ;;  %v2561_v61 = vmax.f32 %v2151_v54, 0.0  ;;  %4181 = vmatprep.mubr.msk.f32.mxu1 %vm1414_vm1, %v1381_v50 }
 0x2cd   :  { %v2560_v11 = vmax.f32 %v2146_v57, 0.0 }
 0x2ce   :  { %4182 = vmatmul.mubr.msk.f32.gmra.mrb[122].mxu1 %vm1414_vm1, %v1382_v59 }
 0x2cf   :  { %v5867_v0 = vpack.c.bf16 %v2561_v61, %v2560_v11  ;;  %v1208_v1 = vpop.f32.mrb[224].mxu0 }
 0x2d0   :  { %v1209_v4 = vadd.f32 %v5851_v23, %v1208_v1  ;;  %v1210_v6 = vpop.f32.mrb[225].mxu0 }
 0x2d1   :  { %v1211_v8 = vpop.f32.mrb[226].mxu0  ;;  %v4105_v3 = vpop.f32.mrb[70].mxu1 }
 0x2d2   :  { %v1383_v10 = vmax.f32 %v1209_v4, 0.0  ;;  %v1212_v19 = vadd.f32 %v5851_v23, %v1211_v8  ;;  %v2161_v12 = vadd.f32 %v5840_v60, %v4105_v3  ;;  %v1213_v13 = vpop.f32.mrb[227].mxu0  ;;  %v2155_v14 = vpop.f32.mrb[71].mxu1 }
 0x2d3   :  { %v2156_v30 = vadd.f32 %v5840_v60, %v2155_v14 }
 0x2d4   :  { %v1384_v16 = vmax.f32 %v1212_v19, 0.0  ;;  %v2563_v18 = vmax.f32 %v2161_v12, 0.0  ;;  %4184 = vmatprep.mubr.msk.f32.mxu1 %vm1414_vm1, %v1383_v10 }
 0x2d5   :  { %v2562_v20 = vmax.f32 %v2156_v30, 0.0 }
 0x2d6   :  { %4185 = vmatmul.mubr.msk.f32.gmra.mrb[124].mxu1 %vm1414_vm1, %v1384_v16 }
 0x2d7   :  { %v5875_v21 = vpack.c.bf16 %v2563_v18, %v2562_v20  ;;  %v1216_v5 = vpop.f32.mrb[228].mxu0 }
 0x2d8   :  { %v1217_v24 = vadd.f32 %v5851_v23, %v1216_v5  ;;  %v1218_v27 = vpop.f32.mrb[229].mxu0 }
 0x2d9   :  { %v1219_v28 = vpop.f32.mrb[230].mxu0  ;;  %v4108_v29 = vpop.f32.mrb[72].mxu1 }
 0x2da   :  { %v1385_v31 = vmax.f32 %v1217_v24, 0.0  ;;  %v1220_v32 = vadd.f32 %v5851_v23, %v1219_v28  ;;  %v2171_v49 = vadd.f32 %v5840_v60, %v4108_v29  ;;  %v1221_v33 = vpop.f32.mrb[231].mxu0  ;;  %v2165_v35 = vpop.f32.mrb[73].mxu1 }
 0x2db   :  { %v2166_v36 = vadd.f32 %v5840_v60, %v2165_v35 }
 0x2dc   :  { %v1386_v37 = vmax.f32 %v1220_v32, 0.0  ;;  %v2565_v38 = vmax.f32 %v2171_v49, 0.0  ;;  %4187 = vmatprep.mubr.msk.f32.mxu1 %vm1414_vm1, %v1385_v31  ;;  %v1249_v32 = vadd.f32 %v5851_v23, %v5200_v34  ;;  %v1257_v34 = vadd.f32 %v5851_v23, %v5219_v48 }
 0x2dd   :  { %v2564_v39 = vmax.f32 %v2166_v36, 0.0 }
 0x2de   :  { %4188 = vmatmul.mubr.msk.f32.gmra.mrb[126].mxu1 %vm1414_vm1, %v1386_v37 }
 0x2df   :  { %v5883_v51 = vpack.c.bf16 %v2565_v38, %v2564_v39  ;;  %v1224_v44 = vpop.f32.mrb[232].mxu0 }
 0x2e0   :  { %v1225_v45 = vadd.f32 %v5851_v23, %v1224_v44  ;;  %v1226_v46 = vpop.f32.mrb[233].mxu0 }
 0x2e1   :  { %v1227_v47 = vpop.f32.mrb[234].mxu0  ;;  %v4111_v50 = vpop.f32.mrb[74].mxu1 }
 0x2e2   :  { %v1387_v40 = vmax.f32 %v1225_v45, 0.0  ;;  %v1228_v54 = vadd.f32 %v5851_v23, %v1227_v47  ;;  %v2181_v55 = vadd.f32 %v5840_v60, %v4111_v50  ;;  %v1229_v56 = vpop.f32.mrb[235].mxu0  ;;  %v2175_v57 = vpop.f32.mrb[75].mxu1  ;;  %v1252_v45 = vadd.f32 %v5851_v23, %v5216_v41 }
 0x2e3   :  { %v2176_v59 = vadd.f32 %v5840_v60, %v2175_v57  ;;  %v1393_v50 = vmax.f32 %v1249_v32, 0.0  ;;  %v1260_v56 = vadd.f32 %v5851_v23, %v5222_v53  ;;  %v1395_v41 = vmax.f32 %v1257_v34, 0.0 }
 0x2e4   :  { %v1388_v61 = vmax.f32 %v1228_v54, 0.0  ;;  %v2567_v11 = vmax.f32 %v2181_v55, 0.0  ;;  %4190 = vmatprep.mubr.msk.f32.mxu1 %vm1414_vm1, %v1387_v40  ;;  %v1394_v55 = vmax.f32 %v1252_v45, 0.0  ;;  %v1265_v57 = vadd.f32 %v5851_v23, %v5232_v58 }
 0x2e5   :  { %v2566_v1 = vmax.f32 %v2176_v59, 0.0 }
 0x2e6   :  { %4191 = vmatmul.mubr.msk.f32.gmra.mrb[128].mxu1 %vm1414_vm1, %v1388_v61  ;;  %v1397_v53 = vmax.f32 %v1265_v57, 0.0 }
 0x2e7   :  { %v5891_v4 = vpack.c.bf16 %v2567_v11, %v2566_v1  ;;  %v1232_v6 = vpop.f32.mrb[236].mxu0  ;;  %v1396_v1 = vmax.f32 %v1260_v56, 0.0 }
 0x2e8   :  { %v1233_v8 = vadd.f32 %v5851_v23, %v1232_v6  ;;  %v1234_v3 = vpop.f32.mrb[237].mxu0  ;;  %v1268_v6 = vadd.f32 %v5851_v23, %v5241_v63 }
 0x2e9   :  { %v1235_v10 = vpop.f32.mrb[238].mxu0  ;;  %v4114_v19 = vpop.f32.mrb[76].mxu1 }
 0x2ea   :  { %v1389_v12 = vmax.f32 %v1233_v8, 0.0  ;;  %v1236_v13 = vadd.f32 %v5851_v23, %v1235_v10  ;;  %v2191_v14 = vadd.f32 %v5840_v60, %v4114_v19  ;;  %v1237_v30 = vpop.f32.mrb[239].mxu0  ;;  %v2185_v16 = vpop.f32.mrb[77].mxu1  ;;  %v1398_v10 = vmax.f32 %v1268_v6, 0.0  ;;  %v5933_v19 = vld [vmem:[%s6178_s5] sm:$0x1] }
 0x2eb   :  { %v2186_v18 = vadd.f32 %v5840_v60, %v2185_v16  ;;  %v2633_v30 = vld [vmem:[#allocation2] sm:$0x1]  ;;  %s4491_s5 = smov [#allocation3]  }
 0x2ec   :  { %v1390_v20 = vmax.f32 %v1236_v13, 0.0  ;;  %v2569_v5 = vmax.f32 %v2191_v14, 0.0  ;;  %4193 = vmatprep.mubr.msk.f32.mxu1 %vm1414_vm1, %v1389_v12  ;;  %2636 = vperm.xlu0 %4447, %v2633_v30   ;;  %s3380_s26 = sshll.u32 %s4491_s5, 4  ;;  %s3381_s26 = int_to_ptr.vmem [resolvable:$true] %s3380_s26 }
 0x2ed   :  { %v2568_v24 = vmax.f32 %v2186_v18, 0.0  ;;  %s4465_s27 = scalar_lea.vmem %s3381_s26, 128  ;;  %p4470_p1 = scmp.lt.s32.totalorder %s3381_s26, %s3381_s26 }
 0x2ee   :  { %4194 = vmatmul.mubr.msk.f32.gmra.mrb[130].mxu1 %vm1414_vm1, %v1390_v20  ;;  %p4466_p0 = scmp.ne.s32.totalorder %s3381_s26, %s4465_s27  ;;  %p4471_p2 = scmp.lt.s32.totalorder %s4465_s27, %s4465_s27 }
 0x2ef   :  { %v5899_v27 = vpack.c.bf16 %v2569_v5, %v2568_v24  ;;  %v1240_v28 = vpop.f32.mrb[240].mxu0 }
 0x2f0   :  { %v1241_v29 = vadd.f32 %v5851_v23, %v1240_v28  ;;  %v1242_v31 = vpop.f32.mrb[241].mxu0  ;;  %p4472_p3 = por %p4471_p2, %p4470_p1 }
 0x2f1   :  { %v1243_v49 = vpop.f32.mrb[242].mxu0  ;;  %v4117_v33 = vpop.f32.mrb[78].mxu1 }
 0x2f2   :  { %v1391_v35 = vmax.f32 %v1241_v29, 0.0  ;;  %v1244_v36 = vadd.f32 %v5851_v23, %v1243_v49  ;;  %v2201_v37 = vadd.f32 %v5840_v60, %v4117_v33  ;;  %v1245_v38 = vpop.f32.mrb[243].mxu0  ;;  %v2195_v39 = vpop.f32.mrb[79].mxu1  ;;  %p4473_p4 = pnand %p4472_p3, %p4466_p0 }
 0x2f3   :  { %v2196_v44 = vadd.f32 %v5840_v60, %v2195_v39 }
 0x2f4   :  { %v1392_v46 = vmax.f32 %v1244_v36, 0.0  ;;  %v2571_v47 = vmax.f32 %v2201_v37, 0.0  ;;  %4196 = vmatprep.mubr.msk.f32.mxu1 %vm1414_vm1, %v1391_v35 }
 0x2f5   :  { %v2570_v40 = vmax.f32 %v2196_v44, 0.0 }
 0x2f6   :  { %4197 = vmatmul.mubr.msk.f32.gmra.mrb[132].mxu1 %vm1414_vm1, %v1392_v46 }
 0x2f7   :  { %v5913_v54 = vpack.c.bf16 %v2571_v47, %v2570_v40  ;;  %4199 = vmatprep.mubr.msk.f32.mxu1 %vm1414_vm1, %v1393_v50 }
 0x2f9   :  { %v4120_v59 = vpop.f32.mrb[80].mxu1 }
 0x2fa   :  { %v2211_v61 = vadd.f32 %v5840_v60, %v4120_v59  ;;  %v2205_v11 = vpop.f32.mrb[81].mxu1  ;;  %4200 = vmatmul.mubr.msk.f32.gmra.mrb[134].mxu1 %vm1414_vm1, %v1394_v55 }
 0x2fb   :  { %v2206_v48 = vadd.f32 %v5840_v60, %v2205_v11  ;;  %4202 = vmatprep.mubr.msk.f32.mxu1 %vm1414_vm1, %v1395_v41 }
 0x2fc   :  { %v2573_v8 = vmax.f32 %v2211_v61, 0.0 }
 0x2fd   :  { %v2572_v3 = vmax.f32 %v2206_v48, 0.0 }
 0x2fe   :  { %4203 = vmatmul.mubr.msk.f32.gmra.mrb[136].mxu1 %vm1414_vm1, %v1396_v1 }
 0x2ff   :  { %v5927_v58 = vpack.c.bf16 %v2573_v8, %v2572_v3  ;;  %4205 = vmatprep.mubr.msk.f32.mxu1 %vm1414_vm1, %v1397_v53 }
 0x301   :  { %v4123_v12 = vpop.f32.mrb[82].mxu1 }
 0x302   :  { %v2221_v13 = vadd.f32 %v5840_v60, %v4123_v12  ;;  %v2215_v14 = vpop.f32.mrb[83].mxu1  ;;  %4206 = vmatmul.mubr.msk.f32.gmra.mrb[138].mxu1 %vm1414_vm1, %v1398_v10 }
 0x303   :  { %v2216_v63 = vadd.f32 %v5840_v60, %v2215_v14  ;;  %3896 = vmatprep.mubr.msk.f32.mxu1 %vm2643_vm2, %v5933_v19 }
 0x304   :  { %v2575_v23 = vmax.f32 %v2221_v13, 0.0 }
 0x305   :  { %v2574_v16 = vmax.f32 %v2216_v63, 0.0 }
 0x306   :  { %3897 = vmatmul.mubr.msk.f32.vlgmr.msra.gmra.mrb[140].mxu1 %vm2643_vm2, %v5933_v19 }
 0x307   :  { %v5942_v18 = vpack.c.bf16 %v2575_v23, %v2574_v16  ;;  %4277 = vmatpush3.bf16.xpose.msk.msra.mxu1 %vm5669_vm3, %v5761_v26  ;;  %3930 = vmatprep.mubr.msk.f32.mxu1 %vm2643_vm2, %v5933_v19 }
 0x308   :  { %4280 = vmatprep.subr.msk.bf16.mxu1 %vm5669_vm3, %v5833_v2 }
 0x309   :  { %v4126_v20 = vpop.f32.mrb[84].mxu1 }
 0x30a   :  { %v2231_v5 = vadd.f32 %v5840_v60, %v4126_v20  ;;  %v2225_v24 = vpop.f32.mrb[85].mxu1 }
 0x30b   :  { %v2226_v28 = vadd.f32 %v5840_v60, %v2225_v24 }
 0x30c   :  { %v2577_v29 = vmax.f32 %v2231_v5, 0.0 }
 0x30d   :  { %v2576_v31 = vmax.f32 %v2226_v28, 0.0 }
 0x30f   :  { %v5954_v32 = vpack.c.bf16 %v2577_v29, %v2576_v31  ;;  %4283 = vmatpush3.bf16.xpose.msk.msra.mxu1 %vm5669_vm3, %v5769_v43 }
 0x310   :  { %4286 = vmatprep.subr.msk.bf16.mxu1 %vm5669_vm3, %v5846_v22 }
 0x311   :  { %v4129_v26 = vpop.f32.mrb[86].mxu1 }
 0x312   :  { %v2241_v2 = vadd.f32 %v5840_v60, %v4129_v26  ;;  %v2235_v49 = vpop.f32.mrb[87].mxu1 }
 0x313   :  { %v2236_v33 = vadd.f32 %v5840_v60, %v2235_v49 }
 0x314   :  { %v2579_v35 = vmax.f32 %v2241_v2, 0.0 }
 0x315   :  { %v2578_v36 = vmax.f32 %v2236_v33, 0.0 }
 0x317   :  { %v5964_v37 = vpack.c.bf16 %v2579_v35, %v2578_v36  ;;  %4289 = vmatpush3.bf16.xpose.msk.msra.mxu1 %vm5669_vm3, %v5777_v62 }
 0x318   :  { %4292 = vmatprep.subr.msk.bf16.mxu1 %vm5669_vm3, %v5859_v42 }
 0x319   :  { %v4132_v43 = vpop.f32.mrb[88].mxu1 }
 0x31a   :  { %v2251_v22 = vadd.f32 %v5840_v60, %v4132_v43  ;;  %v2245_v38 = vpop.f32.mrb[89].mxu1 }
 0x31b   :  { %v2246_v39 = vadd.f32 %v5840_v60, %v2245_v38 }
 0x31c   :  { %v2581_v44 = vmax.f32 %v2251_v22, 0.0 }
 0x31d   :  { %v2580_v45 = vmax.f32 %v2246_v39, 0.0 }
 0x31f   :  { %v5974_v46 = vpack.c.bf16 %v2581_v44, %v2580_v45  ;;  %4295 = vmatpush3.bf16.xpose.msk.msra.mxu1 %vm5669_vm3, %v5785_v15 }
 0x320   :  { %4298 = vmatprep.subr.msk.bf16.mxu1 %vm5669_vm3, %v5867_v0 }
 0x321   :  { %v4135_v62 = vpop.f32.mrb[90].mxu1 }
 0x322   :  { %v2261_v42 = vadd.f32 %v5840_v60, %v4135_v62  ;;  %v2255_v47 = vpop.f32.mrb[91].mxu1 }
 0x323   :  { %v2256_v50 = vadd.f32 %v5840_v60, %v2255_v47 }
 0x324   :  { %v2583_v34 = vmax.f32 %v2261_v42, 0.0 }
 0x325   :  { %v2582_v40 = vmax.f32 %v2256_v50, 0.0 }
 0x327   :  { %v5984_v55 = vpack.c.bf16 %v2583_v34, %v2582_v40  ;;  %4301 = vmatpush3.bf16.xpose.msk.msra.mxu1 %vm5669_vm3, %v5793_v17 }
 0x328   :  { %4304 = vmatprep.subr.msk.bf16.mxu1 %vm5669_vm3, %v5875_v21 }
 0x329   :  { %v4138_v15 = vpop.f32.mrb[92].mxu1 }
 0x32a   :  { %v2271_v0 = vadd.f32 %v5840_v60, %v4138_v15  ;;  %v2265_v56 = vpop.f32.mrb[93].mxu1 }
 0x32b   :  { %v2266_v41 = vadd.f32 %v5840_v60, %v2265_v56 }
 0x32c   :  { %v2585_v57 = vmax.f32 %v2271_v0, 0.0 }
 0x32d   :  { %v2584_v59 = vmax.f32 %v2266_v41, 0.0 }
 0x32f   :  { %v4320_v61 = vpack.c.bf16 %v2585_v57, %v2584_v59  ;;  %4307 = vmatpush3.bf16.xpose.msk.msra.mxu1 %vm5669_vm3, %v5801_v52 }
 0x330   :  { %4310 = vmatprep.subr.msk.bf16.mxu1 %vm5669_vm3, %v5883_v51 }
 0x331   :  { %v4141_v17 = vpop.f32.mrb[94].mxu1 }
 0x332   :  { %v2281_v21 = vadd.f32 %v5840_v60, %v4141_v17  ;;  %v2275_v11 = vpop.f32.mrb[95].mxu1 }
 0x333   :  { %v2276_v48 = vadd.f32 %v5840_v60, %v2275_v11 }
 0x334   :  { %v2587_v1 = vmax.f32 %v2281_v21, 0.0 }
 0x335   :  { %v2586_v6 = vmax.f32 %v2276_v48, 0.0 }
 0x337   :  { %v4326_v8 = vpack.c.bf16 %v2587_v1, %v2586_v6  ;;  %4313 = vmatpush3.bf16.xpose.msk.msra.mxu1 %vm5669_vm3, %v5809_v9 }
 0x338   :  { %4316 = vmatprep.subr.msk.bf16.mxu1 %vm5669_vm3, %v5891_v4 }
 0x339   :  { %v4144_v52 = vpop.f32.mrb[96].mxu1 }
 0x33a   :  { %v2291_v51 = vadd.f32 %v5840_v60, %v4144_v52  ;;  %v2285_v53 = vpop.f32.mrb[97].mxu1 }
 0x33b   :  { %v2286_v3 = vadd.f32 %v5840_v60, %v2285_v53 }
 0x33c   :  { %v2589_v10 = vmax.f32 %v2291_v51, 0.0 }
 0x33d   :  { %v2588_v12 = vmax.f32 %v2286_v3, 0.0 }
 0x33f   :  { %v4332_v13 = vpack.c.bf16 %v2589_v10, %v2588_v12  ;;  %4319 = vmatpush3.bf16.xpose.msk.msra.mxu1 %vm5669_vm3, %v5817_v25 }
 0x340   :  { %4322 = vmatprep.subr.msk.bf16.mxu1 %vm5669_vm3, %v4320_v61 }
 0x341   :  { %v4147_v9 = vpop.f32.mrb[98].mxu1 }
 0x342   :  { %v2301_v14 = vadd.f32 %v5840_v60, %v4147_v9  ;;  %v2295_v4 = vpop.f32.mrb[99].mxu1 }
 0x343   :  { %v2296_v63 = vadd.f32 %v5840_v60, %v2295_v4 }
 0x344   :  { %v2591_v23 = vmax.f32 %v2301_v14, 0.0 }
 0x345   :  { %v2590_v30 = vmax.f32 %v2296_v63, 0.0 }
 0x346   :  { %3931 = vmatmul.mubr.msk.f32.vlgmr.msra.gmra.mrb[142].mxu1 %vm2643_vm2, %v5933_v19 }
 0x347   :  { %v4338_v16 = vpack.c.bf16 %v2591_v23, %v2590_v30  ;;  %4325 = vmatpush3.bf16.xpose.msk.msra.mxu1 %vm5669_vm3, %v5899_v27  ;;  %3964 = vmatprep.mubr.msk.f32.mxu1 %vm2643_vm2, %v5933_v19 }
 0x348   :  { %4328 = vmatprep.subr.msk.bf16.mxu1 %vm5669_vm3, %v4326_v8 }
 0x349   :  { %v4150_v25 = vpop.f32.mrb[100].mxu1 }
 0x34a   :  { %v2311_v20 = vadd.f32 %v5840_v60, %v4150_v25  ;;  %v2305_v5 = vpop.f32.mrb[101].mxu1 }
 0x34b   :  { %v2306_v24 = vadd.f32 %v5840_v60, %v2305_v5 }
 0x34c   :  { %v2593_v28 = vmax.f32 %v2311_v20, 0.0 }
 0x34d   :  { %v2592_v29 = vmax.f32 %v2306_v24, 0.0 }
 0x34f   :  { %v4344_v31 = vpack.c.bf16 %v2593_v28, %v2592_v29  ;;  %4331 = vmatpush3.bf16.xpose.msk.msra.mxu1 %vm5669_vm3, %v5913_v54 }
 0x350   :  { %4334 = vmatprep.subr.msk.bf16.mxu1 %vm5669_vm3, %v4332_v13 }
 0x351   :  { %v4153_v27 = vpop.f32.mrb[102].mxu1 }
 0x352   :  { %v2321_v26 = vadd.f32 %v5840_v60, %v4153_v27  ;;  %v2315_v2 = vpop.f32.mrb[103].mxu1 }
 0x353   :  { %v2316_v49 = vadd.f32 %v5840_v60, %v2315_v2 }
 0x354   :  { %v2595_v33 = vmax.f32 %v2321_v26, 0.0 }
 0x355   :  { %v2594_v35 = vmax.f32 %v2316_v49, 0.0 }
 0x357   :  { %v4350_v36 = vpack.c.bf16 %v2595_v33, %v2594_v35  ;;  %4337 = vmatpush3.bf16.xpose.msk.msra.mxu1 %vm5669_vm3, %v5927_v58 }
 0x358   :  { %4340 = vmatprep.subr.msk.bf16.mxu1 %vm5669_vm3, %v4338_v16 }
 0x359   :  { %v4156_v54 = vpop.f32.mrb[104].mxu1 }
 0x35a   :  { %v2331_v43 = vadd.f32 %v5840_v60, %v4156_v54  ;;  %v2325_v22 = vpop.f32.mrb[105].mxu1 }
 0x35b   :  { %v2326_v38 = vadd.f32 %v5840_v60, %v2325_v22 }
 0x35c   :  { %v2597_v39 = vmax.f32 %v2331_v43, 0.0 }
 0x35d   :  { %v2596_v44 = vmax.f32 %v2326_v38, 0.0 }
 0x35f   :  { %v4356_v45 = vpack.c.bf16 %v2597_v39, %v2596_v44  ;;  %4343 = vmatpush3.bf16.xpose.msk.msra.mxu1 %vm5669_vm3, %v5942_v18 }
 0x360   :  { %4346 = vmatprep.subr.msk.bf16.mxu1 %vm5669_vm3, %v4344_v31 }
 0x361   :  { %v4159_v58 = vpop.f32.mrb[106].mxu1 }
 0x362   :  { %v2341_v62 = vadd.f32 %v5840_v60, %v4159_v58  ;;  %v2335_v42 = vpop.f32.mrb[107].mxu1 }
 0x363   :  { %v2336_v47 = vadd.f32 %v5840_v60, %v2335_v42 }
 0x364   :  { %v2599_v50 = vmax.f32 %v2341_v62, 0.0 }
 0x365   :  { %v2598_v34 = vmax.f32 %v2336_v47, 0.0 }
 0x367   :  { %v4362_v40 = vpack.c.bf16 %v2599_v50, %v2598_v34  ;;  %4349 = vmatpush3.bf16.xpose.msk.msra.mxu1 %vm5669_vm3, %v5954_v32 }
 0x368   :  { %4352 = vmatprep.subr.msk.bf16.mxu1 %vm5669_vm3, %v4350_v36 }
 0x369   :  { %v4162_v18 = vpop.f32.mrb[108].mxu1 }
 0x36a   :  { %v2351_v15 = vadd.f32 %v5840_v60, %v4162_v18  ;;  %v2345_v0 = vpop.f32.mrb[109].mxu1 }
 0x36b   :  { %v2346_v56 = vadd.f32 %v5840_v60, %v2345_v0 }
 0x36c   :  { %v2601_v41 = vmax.f32 %v2351_v15, 0.0 }
 0x36d   :  { %v2600_v57 = vmax.f32 %v2346_v56, 0.0 }
 0x36f   :  { %v6056_v59 = vpack.c.bf16 %v2601_v41, %v2600_v57  ;;  %4355 = vmatpush3.bf16.xpose.msk.msra.mxu1 %vm5669_vm3, %v5964_v37 }
 0x370   :  { %4358 = vmatprep.subr.msk.bf16.mxu1 %vm5669_vm3, %v4356_v45 }
 0x371   :  { %v4165_v32 = vpop.f32.mrb[110].mxu1 }
 0x372   :  { %v2361_v61 = vadd.f32 %v5840_v60, %v4165_v32  ;;  %v2355_v17 = vpop.f32.mrb[111].mxu1 }
 0x373   :  { %v2356_v21 = vadd.f32 %v5840_v60, %v2355_v17 }
 0x374   :  { %v2603_v11 = vmax.f32 %v2361_v61, 0.0 }
 0x375   :  { %v2602_v48 = vmax.f32 %v2356_v21, 0.0 }
 0x377   :  { %v6065_v1 = vpack.c.bf16 %v2603_v11, %v2602_v48  ;;  %4361 = vmatpush3.bf16.xpose.msk.msra.mxu1 %vm5669_vm3, %v5974_v46 }
 0x378   :  { %4364 = vmatprep.subr.msk.bf16.mxu1 %vm5669_vm3, %v4362_v40 }
 0x379   :  { %v4168_v37 = vpop.f32.mrb[112].mxu1 }
 0x37a   :  { %v2371_v6 = vadd.f32 %v5840_v60, %v4168_v37  ;;  %v2365_v8 = vpop.f32.mrb[113].mxu1 }
 0x37b   :  { %v2366_v52 = vadd.f32 %v5840_v60, %v2365_v8 }
 0x37c   :  { %v2605_v51 = vmax.f32 %v2371_v6, 0.0 }
 0x37d   :  { %v2604_v53 = vmax.f32 %v2366_v52, 0.0 }
 0x37f   :  { %v6074_v3 = vpack.c.bf16 %v2605_v51, %v2604_v53  ;;  %4367 = vmatpush3.bf16.xpose.msk.msra.mxu1 %vm5669_vm3, %v5984_v55 }
 0x381   :  { %v4171_v10 = vpop.f32.mrb[114].mxu1 }
 0x382   :  { %v2381_v46 = vadd.f32 %v5840_v60, %v4171_v10  ;;  %v2375_v12 = vpop.f32.mrb[115].mxu1 }
 0x383   :  { %v2376_v13 = vadd.f32 %v5840_v60, %v2375_v12 }
 0x384   :  { %v2607_v9 = vmax.f32 %v2381_v46, 0.0 }
 0x385   :  { %v2606_v14 = vmax.f32 %v2376_v13, 0.0 }
 0x386   :  { %3965 = vmatmul.mubr.msk.f32.vlgmr.msra.gmra.mrb[144].mxu1 %vm2643_vm2, %v5933_v19 }
 0x387   :  { %v6083_v4 = vpack.c.bf16 %v2607_v9, %v2606_v14  ;;  %3998 = vmatprep.mubr.msk.f32.mxu1 %vm2643_vm2, %v5933_v19 }
 0x389   :  { %v4174_v63 = vpop.f32.mrb[116].mxu1 }
 0x38a   :  { %v2391_v23 = vadd.f32 %v5840_v60, %v4174_v63  ;;  %v2385_v55 = vpop.f32.mrb[117].mxu1  ;;  %v2639_v63 = vlaneseq }
 0x38b   :  { %v2386_v30 = vadd.f32 %v5840_v60, %v2385_v55 }
 0x38c   :  { %v2609_v16 = vmax.f32 %v2391_v23, 0.0 }
 0x38d   :  { %v2608_v25 = vmax.f32 %v2386_v30, 0.0 }
 0x38f   :  { %v6089_v20 = vpack.c.bf16 %v2609_v16, %v2608_v25 }
 0x391   :  { %v4177_v5 = vpop.f32.mrb[118].mxu1 }
 0x392   :  { %v2401_v24 = vadd.f32 %v5840_v60, %v4177_v5  ;;  %v2395_v28 = vpop.f32.mrb[119].mxu1  ;;  %v2640_v5 = vshrl.u32 %v2639_v63, 7 }
 0x393   :  { %v2396_v29 = vadd.f32 %v5840_v60, %v2395_v28 }
 0x394   :  { %v2611_v31 = vmax.f32 %v2401_v24, 0.0 }
 0x395   :  { %v2610_v27 = vmax.f32 %v2396_v29, 0.0 }
 0x397   :  { %v6093_v26 = vpack.c.bf16 %v2611_v31, %v2610_v27 }
 0x399   :  { %v4180_v2 = vpop.f32.mrb[120].mxu1 }
 0x39a   :  { %v2411_v49 = vadd.f32 %v5840_v60, %v4180_v2  ;;  %v2405_v33 = vpop.f32.mrb[121].mxu1 }
 0x39b   :  { %v2406_v35 = vadd.f32 %v5840_v60, %v2405_v33 }
 0x39c   :  { %v2613_v36 = vmax.f32 %v2411_v49, 0.0  ;;  %v2641_v49 = vsub.s32 0, %v2640_v5 }
 0x39d   :  { %v2612_v54 = vmax.f32 %v2406_v35, 0.0 }
 0x39f   :  { %v6097_v43 = vpack.c.bf16 %v2613_v36, %v2612_v54  ;;  %v2637_v36 = vpop.permute.xlu0 %2636 }
 0x3a1   :  { %v4183_v22 = vpop.f32.mrb[122].mxu1 }
 0x3a2   :  { %v2421_v38 = vadd.f32 %v5840_v60, %v4183_v22  ;;  %v2415_v39 = vpop.f32.mrb[123].mxu1 }
 0x3a3   :  { %v2416_v44 = vadd.f32 %v5840_v60, %v2415_v39 }
 0x3a4   :  { %v2615_v45 = vmax.f32 %v2421_v38, 0.0 }
 0x3a5   :  { %v2614_v58 = vmax.f32 %v2416_v44, 0.0 }
 0x3a7   :  { %v6101_v62 = vpack.c.bf16 %v2615_v45, %v2614_v58  ;;  %v2642_v45 = vrot.slane %v2637_v36, %v2641_v49 }
 0x3a9   :  { %v4186_v42 = vpop.f32.mrb[124].mxu1 }
 0x3aa   :  { %v2431_v47 = vadd.f32 %v5840_v60, %v4186_v42  ;;  %v2425_v50 = vpop.f32.mrb[125].mxu1 }
 0x3ab   :  { %v2426_v34 = vadd.f32 %v5840_v60, %v2425_v50 }
 0x3ac   :  { %v2617_v40 = vmax.f32 %v2431_v47, 0.0 }
 0x3ad   :  { %v2616_v18 = vmax.f32 %v2426_v34, 0.0 }
 0x3af   :  { %v4368_v15 = vpack.c.bf16 %v2617_v40, %v2616_v18 }
 0x3b1   :  { %v4189_v0 = vpop.f32.mrb[126].mxu1  ;;  %4370 = vmatprep.subr.msk.bf16.mxu1 %vm5669_vm3, %v4368_v15 }
 0x3b2   :  { %v2441_v56 = vadd.f32 %v5840_v60, %v4189_v0  ;;  %v2435_v41 = vpop.f32.mrb[127].mxu1  ;;  %4373 = vmatpush3.bf16.xpose.msk.msra.mxu1 %vm5669_vm3, %v6056_v59 }
 0x3b3   :  { %v2436_v57 = vadd.f32 %v5840_v60, %v2435_v41 }
 0x3b4   :  { %v2619_v32 = vmax.f32 %v2441_v56, 0.0 }
 0x3b5   :  { %v2618_v61 = vmax.f32 %v2436_v57, 0.0 }
 0x3b7   :  { %v4374_v17 = vpack.c.bf16 %v2619_v32, %v2618_v61 }
 0x3b9   :  { %v4192_v21 = vpop.f32.mrb[128].mxu1  ;;  %4376 = vmatprep.subr.msk.bf16.mxu1 %vm5669_vm3, %v4374_v17 }
 0x3ba   :  { %v2451_v11 = vadd.f32 %v5840_v60, %v4192_v21  ;;  %v2445_v48 = vpop.f32.mrb[129].mxu1  ;;  %4379 = vmatpush3.bf16.xpose.msk.msra.mxu1 %vm5669_vm3, %v6065_v1 }
 0x3bb   :  { %v2446_v37 = vadd.f32 %v5840_v60, %v2445_v48 }
 0x3bc   :  { %v2621_v6 = vmax.f32 %v2451_v11, 0.0 }
 0x3bd   :  { %v2620_v59 = vmax.f32 %v2446_v37, 0.0 }
 0x3bf   :  { %v4380_v8 = vpack.c.bf16 %v2621_v6, %v2620_v59 }
 0x3c1   :  { %v4195_v52 = vpop.f32.mrb[130].mxu1  ;;  %4382 = vmatprep.subr.msk.bf16.mxu1 %vm5669_vm3, %v4380_v8 }
 0x3c2   :  { %v2461_v51 = vadd.f32 %v5840_v60, %v4195_v52  ;;  %v2455_v53 = vpop.f32.mrb[131].mxu1  ;;  %4385 = vmatpush3.bf16.xpose.msk.msra.mxu1 %vm5669_vm3, %v6074_v3 }
 0x3c3   :  { %v2456_v10 = vadd.f32 %v5840_v60, %v2455_v53 }
 0x3c4   :  { %v2623_v46 = vmax.f32 %v2461_v51, 0.0 }
 0x3c5   :  { %v2622_v1 = vmax.f32 %v2456_v10, 0.0 }
 0x3c7   :  { %v4386_v12 = vpack.c.bf16 %v2623_v46, %v2622_v1 }
 0x3c9   :  { %v4198_v13 = vpop.f32.mrb[132].mxu1  ;;  %4388 = vmatprep.subr.msk.bf16.mxu1 %vm5669_vm3, %v4386_v12 }
 0x3ca   :  { %v2471_v9 = vadd.f32 %v5840_v60, %v4198_v13  ;;  %v2465_v14 = vpop.f32.mrb[133].mxu1  ;;  %4391 = vmatpush3.bf16.xpose.msk.msra.mxu1 %vm5669_vm3, %v6083_v4 }
 0x3cb   :  { %v2466_v23 = vadd.f32 %v5840_v60, %v2465_v14 }
 0x3cc   :  { %v2625_v3 = vmax.f32 %v2471_v9, 0.0 }
 0x3cd   :  { %v2624_v55 = vmax.f32 %v2466_v23, 0.0  ;;  %v4201_v30 = vpop.f32.mrb[134].mxu1 }
 0x3ce   :  { %v2481_v16 = vadd.f32 %v5840_v60, %v4201_v30  ;;  %v2475_v25 = vpop.f32.mrb[135].mxu1 }
 0x3cf   :  { %v4392_v24 = vpack.c.bf16 %v2625_v3, %v2624_v55  ;;  %v2476_v28 = vadd.f32 %v5840_v60, %v2475_v25 }
 0x3d0   :  { %v2627_v29 = vmax.f32 %v2481_v16, 0.0 }
 0x3d1   :  { %v2626_v31 = vmax.f32 %v2476_v28, 0.0  ;;  %v4204_v27 = vpop.f32.mrb[136].mxu1  ;;  %4394 = vmatprep.subr.msk.bf16.mxu1 %vm5669_vm3, %v4392_v24 }
 0x3d2   :  { %v2491_v4 = vadd.f32 %v5840_v60, %v4204_v27  ;;  %v2485_v2 = vpop.f32.mrb[137].mxu1  ;;  %4397 = vmatpush3.bf16.xpose.msk.msra.mxu1 %vm5669_vm3, %v6089_v20 }
 0x3d3   :  { %v4398_v33 = vpack.c.bf16 %v2627_v29, %v2626_v31  ;;  %v2486_v35 = vadd.f32 %v5840_v60, %v2485_v2 }
 0x3d4   :  { %v2629_v54 = vmax.f32 %v2491_v4, 0.0 }
 0x3d5   :  { %v2628_v22 = vmax.f32 %v2486_v35, 0.0  ;;  %v4207_v38 = vpop.f32.mrb[138].mxu1  ;;  %4400 = vmatprep.subr.msk.bf16.mxu1 %vm5669_vm3, %v4398_v33 }
 0x3d6   :  { %v2501_v39 = vadd.f32 %v5840_v60, %v4207_v38  ;;  %v2495_v44 = vpop.f32.mrb[139].mxu1 }
 0x3d7   :  { %v4404_v58 = vpack.c.bf16 %v2629_v54, %v2628_v22  ;;  %v2496_v42 = vadd.f32 %v5840_v60, %v2495_v44  ;;  %v4490_v60 = vmov 1966171168  }
 0x3d8   :  { %v2631_v47 = vmax.f32 %v2501_v39, 0.0 }
 0x3d9   :  { %v2630_v20 = vmax.f32 %v2496_v42, 0.0  ;;  %v3097_v50 = vpop.f32.mrb[140].mxu1 }
 0x3da   :  { %4403 = vmatpush3.bf16.xpose.msk.msra.mxu1 %vm5669_vm3, %v6093_v26  ;;  %v3098_v34 = vadd.f32 %v3097_v50, %v2642_v45  ;;  %v3099_v40 = vpop.f32.mrb[141].mxu1  ;;  %v3328_v26 = vunpack.c.l.s4 %v4490_v60 }
 0x3db   :  { %v4410_v18 = vpack.c.bf16 %v2631_v47, %v2630_v20  ;;  %4406 = vmatprep.subr.msk.bf16.mxu1 %vm5669_vm3, %v4404_v58  ;;  %v3100_v15 = vadd.f32 %v3099_v40, %v2642_v45 }
 0x3dc   :  { %v3329_v56 = vunpack.c.0.s8 %v3328_v26 }
 0x3dd   :  { %v3323_v0 = vcombine.low %v3098_v34, %v3100_v15 }
 0x3de   :  { %v3332_v61 = vsub.s32 %v3329_v56, %v2640_v5 }
 0x3e2   :  { %4409 = vmatpush3.bf16.xpose.msk.msra.mxu1 %vm5669_vm3, %v6097_v43  ;;  %v3333_v43 = vrot.slane %v3323_v0, %v3332_v61 }
 0x3e3   :  { %4412 = vmatprep.subr.msk.bf16.mxu1 %vm5669_vm3, %v4410_v18 }
 0x3ea   :  { %4415 = vmatpush3.bf16.xpose.msk.msra.mxu1 %vm5669_vm3, %v6101_v62 }
 0x3f1   :  { %3999 = vmatmul.mubr.msk.f32.vlgmr.msra.gmra.mrb[146].mxu1 %vm2643_vm2, %v5933_v19 }
 0x419   :  { %v3168_v41 = vpop.f32.mrb[142].mxu1 }
 0x41a   :  { %v3169_v57 = vadd.f32 %v3168_v41, %v2642_v45  ;;  %v3170_v32 = vpop.f32.mrb[143].mxu1 }
 0x41b   :  { %v3171_v17 = vadd.f32 %v3170_v32, %v2642_v45 }
 0x41d   :  { %v3324_v21 = vcombine.low %v3169_v57, %v3171_v17 }
 0x41f   :  { %v3340_v11 = vrot.slane %v3324_v21, %v3332_v61 }
 0x421   :  { %v3355_v48 = vcombine.low %v3333_v43, %v3340_v11 }
 0x423   :  { %v3363_v12 = vrot.slane %v3355_v48, %v3332_v61 }
 0x459   :  { %v3239_v37 = vpop.f32.mrb[144].mxu1 }
 0x45a   :  { %v3240_v6 = vadd.f32 %v3239_v37, %v2642_v45  ;;  %v3241_v59 = vpop.f32.mrb[145].mxu1 }
 0x45b   :  { %v3242_v7 = vadd.f32 %v3241_v59, %v2642_v45 }
 0x45d   :  { %v3325_v62 = vcombine.low %v3240_v6, %v3242_v7 }
 0x45f   :  { %v3347_v10 = vrot.slane %v3325_v62, %v3332_v61 }
 0x4c4   :  { %v3310_v8 = vpop.f32.mrb[146].mxu1 }
 0x4c5   :  { %v3311_v52 = vadd.f32 %v3310_v8, %v2642_v45  ;;  %v3312_v19 = vpop.f32.mrb[147].mxu1 }
 0x4c6   :  { %v3313_v51 = vadd.f32 %v3312_v19, %v2642_v45 }
 0x4c8   :  { %v3326_v53 = vcombine.low %v3311_v52, %v3313_v51 }
 0x4ca   :  { %v3354_v46 = vrot.slane %v3326_v53, %v3332_v61 }
 0x4cc   :  { %v3356_v1 = vcombine.low %v3347_v10, %v3354_v46 }
 0x4ce   :  { %v3370_v13 = vrot.slane %v3356_v1, %v3332_v61 }
 0x4d0   :  { %v3371_v9 = vcombine.low %v3363_v12, %v3370_v13 }
 0x4d2   :  { %3373 = vst [vmem:[#allocation3] sm:$0xff] %v3371_v9 }
 0x4d3   :  { %4476 = shalt.err (!%p4473_p4)
}
 0x4d4   :  { %s4477_s6 = scalar_lea.hbm %s6180_s7, 128 }
 0x4d5   :  { %p4478_p5 = scmp.ne.s32.totalorder %s6180_s7, %s4477_s6  ;;  %p4481_p6 = scmp.lt.u32.totalorder %s4477_s6, %s6180_s7 }
 0x4d7   :  { %p4483_p7 = pnand %p4481_p6, %p4478_p5 }
 0x4d9   :  { %4486 = shalt.err (!%p4483_p7)
}
 0x4da   :  { %3383 = dma.vmem_to_hbm [thread:$0]  %s3381_s26, 128, %s6180_s7, [#allocation4]  }
 0x4db   :  { %4487 = dma.done.wait [#allocation4], 128  }
 0x4dc   :  { %4488 = vsyncadd [#allocation4], 4294967168 }
 0x4dd   :  { %3387 = vsyncpa [#allocation4], 1 }

</bundles_post_ra>
